<compile_context>
chip_gen: v5e
topology: v5e:2x2
jax: 0.10.0
libtpu: 0.0.40
codegen_flags: <defaults>
</compile_context>

<pallas_src>
import functools
import math

import jax
import jax.numpy as jnp
from jax.experimental import pallas as pl
from jax.experimental.pallas import tpu as pltpu


# ----------------------------- Pallas kernels ------------------------------

def _selfattn_kernel(tgt_ref, qp_ref,
                     wq_ref, bq_ref, wk_ref, bk_ref, wv_ref, bv_ref,
                     wo_ref, bo_ref, g1_ref, be1_ref,
                     woff_ref, boff_ref, wattn_ref, battn_ref, grp_ref,
                     tgt1_ref, off_ref, attnw_ref,
                     *, heads, eps):
    """Fused self-attention block for one batch element:
    QKV proj -> per-head SDPA -> out-proj -> residual -> LayerNorm1
    -> deformable offset / attention-weight projections (+ grouped softmax)."""
    t = tgt_ref[0].astype(jnp.float32)             # (L, C)
    x = t + qp_ref[0].astype(jnp.float32)          # q = k = tgt + query_pos
    L, C = t.shape
    dh = C // heads
    scale = 1.0 / math.sqrt(dh)

    acc = jnp.zeros((L, C), jnp.float32)
    for h in range(heads):                         # static unroll over heads
        qh = jnp.dot(x, wq_ref[h], preferred_element_type=jnp.float32) + bq_ref[h]
        kh = jnp.dot(x, wk_ref[h], preferred_element_type=jnp.float32) + bk_ref[h]
        vh = jnp.dot(t, wv_ref[h], preferred_element_type=jnp.float32) + bv_ref[h]
        s = jax.lax.dot_general(qh, kh, (((1,), (1,)), ((), ())),
                                preferred_element_type=jnp.float32) * scale
        s = s - jnp.max(s, axis=-1, keepdims=True)
        p = jnp.exp(s)
        p = p / jnp.sum(p, axis=-1, keepdims=True)
        oh = jnp.dot(p, vh, preferred_element_type=jnp.float32)
        acc = acc + jnp.dot(oh, wo_ref[h], preferred_element_type=jnp.float32)

    y = t + acc + bo_ref[...]                      # residual (dropout1 = identity)
    mu = jnp.mean(y, axis=-1, keepdims=True)
    yc = y - mu
    var = jnp.mean(yc * yc, axis=-1, keepdims=True)
    y1 = yc * jax.lax.rsqrt(var + eps) * g1_ref[...] + be1_ref[...]   # norm1
    tgt1_ref[0, :, :] = y1.astype(tgt1_ref.dtype)

    # deformable-attention query-side projections (fused epilogue)
    off = jnp.dot(y1, woff_ref[...], preferred_element_type=jnp.float32) + boff_ref[...]
    off_ref[0, :, :] = off.astype(off_ref.dtype)

    logits = jnp.dot(y1, wattn_ref[...], preferred_element_type=jnp.float32) + battn_ref[...]
    # grouped softmax over (scales*k_points) per head: subtracting the row-wise
    # global max is valid for every group; group sums come from a block-diagonal
    # indicator matmul (grp), avoiding any in-kernel reshape/relayout.
    e = jnp.exp(logits - jnp.max(logits, axis=-1, keepdims=True))
    gs = jnp.dot(e, grp_ref[...], preferred_element_type=jnp.float32)
    attnw_ref[0, :, :] = (e / gs).astype(attnw_ref.dtype)


def _value_proj_kernel(mem_ref, w_ref, b_ref, out_ref):
    """All-layer multi-scale value projection: (T, C) x (C, N_dec*C)."""
    out_ref[0, :, :] = (jnp.dot(mem_ref[0].astype(jnp.float32), w_ref[...],
                                preferred_element_type=jnp.float32)
                        + b_ref[...]).astype(out_ref.dtype)


def _tail_kernel(draw_ref, tgt1_ref, wdo_ref, bdo_ref, g2_ref, be2_ref,
                 w1_ref, b1_ref, w2_ref, b2_ref, g3_ref, be3_ref,
                 out_ref, *, eps):
    """Fused: deformable out-proj + residual + LN2 + FFN + residual + LN3."""
    d = jnp.dot(draw_ref[0].astype(jnp.float32), wdo_ref[...],
                preferred_element_type=jnp.float32) + bdo_ref[...]
    y = tgt1_ref[0].astype(jnp.float32) + d        # residual (dropout2 = identity)
    mu = jnp.mean(y, axis=-1, keepdims=True)
    yc = y - mu
    var = jnp.mean(yc * yc, axis=-1, keepdims=True)
    y = yc * jax.lax.rsqrt(var + eps) * g2_ref[...] + be2_ref[...]    # norm2

    h = jnp.dot(y, w1_ref[...], preferred_element_type=jnp.float32) + b1_ref[...]
    h = jnp.maximum(h, 0.0)                        # relu (dropout = identity)
    h2 = jnp.dot(h, w2_ref[...], preferred_element_type=jnp.float32) + b2_ref[...]
    z = y + h2                                     # residual (dropout3 = identity)
    mu = jnp.mean(z, axis=-1, keepdims=True)
    zc = z - mu
    var = jnp.mean(zc * zc, axis=-1, keepdims=True)
    z = zc * jax.lax.rsqrt(var + eps) * g3_ref[...] + be3_ref[...]    # norm3
    out_ref[0, :, :] = z.astype(out_ref.dtype)


# ------------------------------ kernel wrappers -----------------------------

def _batch_spec(L, C):
    return pl.BlockSpec((1, L, C), lambda b: (b, 0, 0))


def _full_spec(shape):
    nd = len(shape)
    return pl.BlockSpec(tuple(shape), lambda b, _nd=nd: (0,) * _nd)


_PAR = pltpu.CompilerParams(dimension_semantics=("parallel",))


def fused_self_attention(p, tgt_b, qp_b, grp, *, heads, noff, na, eps=1e-5):
    B, L, C = tgt_b.shape
    dh = C // heads
    # pre-split per-head weights: leading-dim indexing inside the kernel,
    # no lane slicing / relayouts of activations.
    wq = p["Wq"].reshape(C, heads, dh).transpose(1, 0, 2)   # (h, C, dh)
    wk = p["Wk"].reshape(C, heads, dh).transpose(1, 0, 2)
    wv = p["Wv"].reshape(C, heads, dh).transpose(1, 0, 2)
    bq = p["bq"].reshape(heads, 1, dh)
    bk = p["bk"].reshape(heads, 1, dh)
    bv = p["bv"].reshape(heads, 1, dh)
    wo = p["Wo"].reshape(heads, dh, C)                      # (h, dh, C)
    bo = p["bo"].reshape(1, C)

    kernel = functools.partial(_selfattn_kernel, heads=heads, eps=eps)
    return pl.pallas_call(
        kernel,
        out_shape=(jax.ShapeDtypeStruct((B, L, C), jnp.float32),
                   jax.ShapeDtypeStruct((B, L, noff), jnp.float32),
                   jax.ShapeDtypeStruct((B, L, na), jnp.float32)),
        grid=(B,),
        in_specs=[
            _batch_spec(L, C), _batch_spec(L, C),
            _full_spec(wq.shape), _full_spec(bq.shape),
            _full_spec(wk.shape), _full_spec(bk.shape),
            _full_spec(wv.shape), _full_spec(bv.shape),
            _full_spec(wo.shape), _full_spec(bo.shape),
            _full_spec((1, C)), _full_spec((1, C)),
            _full_spec(p["d_Woff"].shape), _full_spec((1, noff)),
            _full_spec(p["d_Wattn"].shape), _full_spec((1, na)),
            _full_spec(grp.shape),
        ],
        out_specs=(
            _batch_spec(L, C),
            pl.BlockSpec((1, L, noff), lambda b: (b, 0, 0)),
            pl.BlockSpec((1, L, na), lambda b: (b, 0, 0)),
        ),
        compiler_params=_PAR,
    )(tgt_b, qp_b, wq, bq, wk, bk, wv, bv, wo, bo,
      p["ln1_g"].reshape(1, C), p["ln1_b"].reshape(1, C),
      p["d_Woff"], p["d_boff"].reshape(1, noff),
      p["d_Wattn"], p["d_battn"].reshape(1, na), grp)


def value_projection_all_layers(mem_flat, w_all, b_all):
    """mem_flat: (B, T, C);  w_all: (C, N_dec*C);  b_all: (N_dec*C,).
    One lane-dense matmul covering every layer's value projection."""
    B, T, C = mem_flat.shape
    NC = w_all.shape[1]
    return pl.pallas_call(
        _value_proj_kernel,
        out_shape=jax.ShapeDtypeStruct((B, T, NC), jnp.float32),
        grid=(B,),
        in_specs=[pl.BlockSpec((1, T, C), lambda bb: (bb, 0, 0)),
                  _full_spec(w_all.shape), _full_spec((1, NC))],
        out_specs=pl.BlockSpec((1, T, NC), lambda bb: (bb, 0, 0)),
        compiler_params=_PAR,
    )(mem_flat, w_all, b_all.reshape(1, NC))


def fused_tail(p, d_raw, tgt1, *, eps=1e-5):
    B, L, C = tgt1.shape
    F = p["W1"].shape[1]
    kernel = functools.partial(_tail_kernel, eps=eps)
    return pl.pallas_call(
        kernel,
        out_shape=jax.ShapeDtypeStruct((B, L, C), jnp.float32),
        grid=(B,),
        in_specs=[_batch_spec(L, C), _batch_spec(L, C),
                  _full_spec((C, C)), _full_spec((1, C)),
                  _full_spec((1, C)), _full_spec((1, C)),
                  _full_spec((C, F)), _full_spec((1, F)),
                  _full_spec((F, C)), _full_spec((1, C)),
                  _full_spec((1, C)), _full_spec((1, C))],
        out_specs=_batch_spec(L, C),
        compiler_params=_PAR,
    )(d_raw, tgt1, p["d_Wout"], p["d_bout"].reshape(1, C),
      p["ln2_g"].reshape(1, C), p["ln2_b"].reshape(1, C),
      p["W1"], p["b1"].reshape(1, F),
      p["W2"], p["b2"].reshape(1, C),
      p["ln3_g"].reshape(1, C), p["ln3_b"].reshape(1, C))


# ------------------------- plain-JAX helper (gather) ------------------------

def _bilinear_sample(value, px, py):
    """value: (B, H, W, M, Ch); px/py: (B, Lq, M, K) pixel coords.
    Zero padding outside the feature map (grid_sample-like, align_corners=False)."""
    # TODO(synk): bilinear grid-sample gather stays in plain JAX (no clean Pallas gather on TPU at these sizes).
    B, H, W, M, Ch = value.shape
    x0 = jnp.floor(px)
    y0 = jnp.floor(py)
    x1 = x0 + 1.0
    y1 = y0 + 1.0
    wx1 = px - x0
    wx0 = 1.0 - wx1
    wy1 = py - y0
    wy0 = 1.0 - wy1

    b_idx = jnp.arange(B)[:, None, None, None]
    m_idx = jnp.arange(M)[None, None, :, None]

    def gather(xi, yi):
        valid = (xi >= 0) & (xi <= W - 1) & (yi >= 0) & (yi <= H - 1)
        xc = jnp.clip(xi, 0, W - 1).astype(jnp.int32)
        yc = jnp.clip(yi, 0, H - 1).astype(jnp.int32)
        v = value[b_idx, yc, xc, m_idx]  # (B, Lq, M, K, Ch)
        return v * valid[..., None].astype(v.dtype)

    out = (gather(x0, y0) * (wx0 * wy0)[..., None]
           + gather(x1, y0) * (wx1 * wy0)[..., None]
           + gather(x0, y1) * (wx0 * wy1)[..., None]
           + gather(x1, y1) * (wx1 * wy1)[..., None])
    return out


def deformable_sample(val_flat, offsets, attnw, ref_b, shapes, *, heads, k_points):
    """Multi-scale deformable sampling + per-point weighting (pre output proj).
    val_flat: (B, T, C) projected memory values (all scales concatenated);
    offsets: (B, L, 2*M*Ls*K); attnw: (B, L, M*Ls*K); ref_b: (B, L, 2) in [0,1]."""
    B, L, _ = offsets.shape
    C = val_flat.shape[-1]
    M = heads
    Ch = C // M
    Ls = len(shapes)
    K = k_points
    off = offsets.reshape(B, L, M, Ls, K, 2)
    aw = attnw.reshape(B, L, M, Ls, K)
    out = jnp.zeros((B, L, M, Ch), jnp.float32)
    tok = 0
    for l, (Hl, Wl) in enumerate(shapes):
        val = val_flat[:, tok:tok + Hl * Wl, :].reshape(B, Hl, Wl, M, Ch)
        tok += Hl * Wl
        normalizer = jnp.array([Wl, Hl], jnp.float32)   # offset last dim is (x, y)
        loc = ref_b[:, :, None, None, :] + off[:, :, :, l, :, :] / normalizer
        px = loc[..., 0] * Wl - 0.5
        py = loc[..., 1] * Hl - 0.5
        sampled = _bilinear_sample(val, px, py)          # (B, L, M, K, Ch)
        out = out + jnp.sum(aw[:, :, :, l, :, None] * sampled, axis=3)
    return out.reshape(B, L, C)


# -------------------------- module forward functions ------------------------

def decoder_layer_forward(p, tgt_b, qp_b, ref_b, val, shapes, grp,
                          *, heads, k_points, scales):
    na = heads * scales * k_points
    noff = 2 * na
    # (A) fused self-attention block + deformable query-side projections
    tgt1, offsets, attnw = fused_self_attention(p, tgt_b, qp_b, grp,
                                                heads=heads, noff=noff, na=na)
    # plain-JAX glue: bilinear sampling + per-point weighting on the
    # (pre-computed, hoisted) value projection of this layer
    d_raw = deformable_sample(val, offsets, attnw, ref_b, shapes,
                              heads=heads, k_points=k_points)
    # (C) fused deformable out-proj + LN2 + FFN + LN3
    return fused_tail(p, d_raw, tgt1)


def decoder_box_forward(layer_params, tgt, memory, ref_point, poses, query_pos,
                        *, heads, k_points, scales):
    # one-time layout change to batch-major; all layers stay batch-major.
    tgt_b = tgt.transpose(1, 0, 2)          # (B, L, C)
    qp_b = query_pos.transpose(1, 0, 2)     # (B, L, C)
    ref_b = ref_point.transpose(1, 0, 2)    # (B, L, 2)
    C = tgt.shape[-1]

    # ---- layer-invariant work hoisted out of the layer loop ----
    shapes = [(m.shape[1], m.shape[2]) for m in memory]
    mem_flat = jnp.concatenate(
        [(m + pz).reshape(m.shape[0], -1, m.shape[-1])
         for m, pz in zip(memory, poses)], axis=1)            # (B, T, C)
    na = heads * scales * k_points
    gid = jnp.arange(na) // (scales * k_points)
    grp = (gid[:, None] == gid[None, :]).astype(jnp.float32)  # block-diag indicator

    # all layers' multi-scale value projections in ONE lane-dense matmul
    w_all = jnp.concatenate([p["d_Wval"] for p in layer_params], axis=1)  # (C, N*C)
    b_all = jnp.concatenate([p["d_bval"] for p in layer_params], axis=0)  # (N*C,)
    val_all = value_projection_all_layers(mem_flat, w_all, b_all)         # (B, T, N*C)

    out = tgt_b
    for i, p in enumerate(layer_params):  # Decoder_Box: norm=None, return_intermediate=False
        val = jax.lax.slice_in_dim(val_all, i * C, (i + 1) * C, axis=2)   # lane-aligned
        out = decoder_layer_forward(p, out, qp_b, ref_b, val, shapes, grp,
                                    heads=heads, k_points=k_points, scales=scales)
    return out.transpose(1, 0, 2)           # back to (L, B, C)


# ------------------------------ parameter init ------------------------------

def init_layer_params(key, d_model, heads, d_ff, k_points, scales):
    C = d_model
    keys = jax.random.split(key, 12)

    def w(kk, shape, s=0.02):
        return jax.random.normal(kk, shape, jnp.float32) * s

    p = {
        "Wq": w(keys[0], (C, C)), "bq": jnp.zeros((C,), jnp.float32),
        "Wk": w(keys[1], (C, C)), "bk": jnp.zeros((C,), jnp.float32),
        "Wv": w(keys[2], (C, C)), "bv": jnp.zeros((C,), jnp.float32),
        "Wo": w(keys[3], (C, C)), "bo": jnp.zeros((C,), jnp.float32),
        "ln1_g": jnp.ones((C,), jnp.float32), "ln1_b": jnp.zeros((C,), jnp.float32),
        "ln2_g": jnp.ones((C,), jnp.float32), "ln2_b": jnp.zeros((C,), jnp.float32),
        "ln3_g": jnp.ones((C,), jnp.float32), "ln3_b": jnp.zeros((C,), jnp.float32),
        "W1": w(keys[4], (C, d_ff)), "b1": jnp.zeros((d_ff,), jnp.float32),
        "W2": w(keys[5], (d_ff, C)), "b2": jnp.zeros((C,), jnp.float32),
        # deformable attention projections
        "d_Woff": w(keys[6], (C, 2 * heads * scales * k_points)),
        "d_boff": jnp.zeros((2 * heads * scales * k_points,), jnp.float32),
        "d_Wattn": w(keys[7], (C, heads * scales * k_points)),
        "d_battn": jnp.zeros((heads * scales * k_points,), jnp.float32),
        "d_Wval": w(keys[8], (C, C)), "d_bval": jnp.zeros((C,), jnp.float32),
        "d_Wout": w(keys[9], (C, C)), "d_bout": jnp.zeros((C,), jnp.float32),
    }
    return p


# ----------------------------------- main ------------------------------------

if __name__ == "__main__":
    key = jax.random.PRNGKey(0)

    # Small, module-consistent shapes
    d_model, heads, d_ff = 32, 4, 64
    k_points, scales = 2, 2
    last_h, last_w = 4, 4
    N_dec = 2
    L, B = 8, 2  # num queries, batch

    keys = jax.random.split(key, N_dec + 8)
    layer_params = [
        init_layer_params(keys[i], d_model, heads, d_ff, k_points, scales)
        for i in range(N_dec)
    ]

    tgt = jax.random.normal(keys[N_dec + 0], (L, B, d_model), jnp.float32)
    query_pos = jax.random.normal(keys[N_dec + 1], (L, B, d_model), jnp.float32)
    ref_point = jax.random.uniform(keys[N_dec + 2], (L, B, 2), jnp.float32)

    # multi-scale memory: scales=2 feature maps, channels-last (B, H, W, C)
    mem_shapes = [(B, last_h * 2, last_w * 2, d_model), (B, last_h, last_w, d_model)]
    memory = [jax.random.normal(keys[N_dec + 3 + i], s, jnp.float32)
              for i, s in enumerate(mem_shapes)]
    poses = [jax.random.normal(keys[N_dec + 5 + i], s, jnp.float32)
             for i, s in enumerate(mem_shapes)]

    fwd = jax.jit(functools.partial(decoder_box_forward,
                                    heads=heads, k_points=k_points, scales=scales))
    out = fwd(layer_params, tgt, memory, ref_point, poses, query_pos)
    out = jax.block_until_ready(out)
    assert out.shape == (L, B, d_model)
    print("KERNEL_OK")
</pallas_src>

<mosaic_0001>
module attributes {stable_mosaic.version = 11 : i64} {
  func.func @_selfattn_kernel(%arg0: i32, %arg1: memref<1x8x32xf32, #tpu.memory_space<vmem>>, %arg2: memref<1x8x32xf32, #tpu.memory_space<vmem>>, %arg3: memref<4x32x8xf32, #tpu.memory_space<vmem>>, %arg4: memref<4x1x8xf32, #tpu.memory_space<vmem>>, %arg5: memref<4x32x8xf32, #tpu.memory_space<vmem>>, %arg6: memref<4x1x8xf32, #tpu.memory_space<vmem>>, %arg7: memref<4x32x8xf32, #tpu.memory_space<vmem>>, %arg8: memref<4x1x8xf32, #tpu.memory_space<vmem>>, %arg9: memref<4x8x32xf32, #tpu.memory_space<vmem>>, %arg10: memref<1x32xf32, #tpu.memory_space<vmem>>, %arg11: memref<1x32xf32, #tpu.memory_space<vmem>>, %arg12: memref<1x32xf32, #tpu.memory_space<vmem>>, %arg13: memref<32x32xf32, #tpu.memory_space<vmem>>, %arg14: memref<1x32xf32, #tpu.memory_space<vmem>>, %arg15: memref<32x16xf32, #tpu.memory_space<vmem>>, %arg16: memref<1x16xf32, #tpu.memory_space<vmem>>, %arg17: memref<16x16xf32, #tpu.memory_space<vmem>>, %arg18: memref<1x8x32xf32, #tpu.memory_space<vmem>>, %arg19: memref<1x8x32xf32, #tpu.memory_space<vmem>>, %arg20: memref<1x8x16xf32, #tpu.memory_space<vmem>>) attributes {dimension_semantics = [#tpu.dimension_semantics<parallel>], iteration_bounds = array<i64: 2>, scalar_prefetch = 0 : i64, scratch_operands = 0 : i64, tpu.core_type = #tpu.core_type<tc>, window_params = [{transform_indices = @transform_0, window_bounds = array<i64: 1, 8, 32>}, {transform_indices = @transform_1, window_bounds = array<i64: 1, 8, 32>}, {pipeline_mode = #tpu.pipeline_mode<synchronous>, transform_indices = @transform_2, window_bounds = array<i64: 4, 32, 8>}, {pipeline_mode = #tpu.pipeline_mode<synchronous>, transform_indices = @transform_3, window_bounds = array<i64: 4, 1, 8>}, {pipeline_mode = #tpu.pipeline_mode<synchronous>, transform_indices = @transform_4, window_bounds = array<i64: 4, 32, 8>}, {pipeline_mode = #tpu.pipeline_mode<synchronous>, transform_indices = @transform_5, window_bounds = array<i64: 4, 1, 8>}, {pipeline_mode = #tpu.pipeline_mode<synchronous>, transform_indices = @transform_6, window_bounds = array<i64: 4, 32, 8>}, {pipeline_mode = #tpu.pipeline_mode<synchronous>, transform_indices = @transform_7, window_bounds = array<i64: 4, 1, 8>}, {pipeline_mode = #tpu.pipeline_mode<synchronous>, transform_indices = @transform_8, window_bounds = array<i64: 4, 8, 32>}, {pipeline_mode = #tpu.pipeline_mode<synchronous>, transform_indices = @transform_9, window_bounds = array<i64: 1, 32>}, {pipeline_mode = #tpu.pipeline_mode<synchronous>, transform_indices = @transform_10, window_bounds = array<i64: 1, 32>}, {pipeline_mode = #tpu.pipeline_mode<synchronous>, transform_indices = @transform_11, window_bounds = array<i64: 1, 32>}, {pipeline_mode = #tpu.pipeline_mode<synchronous>, transform_indices = @transform_12, window_bounds = array<i64: 32, 32>}, {pipeline_mode = #tpu.pipeline_mode<synchronous>, transform_indices = @transform_13, window_bounds = array<i64: 1, 32>}, {pipeline_mode = #tpu.pipeline_mode<synchronous>, transform_indices = @transform_14, window_bounds = array<i64: 32, 16>}, {pipeline_mode = #tpu.pipeline_mode<synchronous>, transform_indices = @transform_15, window_bounds = array<i64: 1, 16>}, {pipeline_mode = #tpu.pipeline_mode<synchronous>, transform_indices = @transform_16, window_bounds = array<i64: 16, 16>}, {transform_indices = @transform_17, window_bounds = array<i64: 1, 8, 32>}, {transform_indices = @transform_18, window_bounds = array<i64: 1, 8, 32>}, {transform_indices = @transform_19, window_bounds = array<i64: 1, 8, 16>}]} {
    %c0 = arith.constant 0 : index
    %c0_0 = arith.constant 0 : index
    %c0_1 = arith.constant 0 : index
    %0 = vector.load %arg1[%c0, %c0_0, %c0_1] : memref<1x8x32xf32, #tpu.memory_space<vmem>>, vector<1x8x32xf32>
    %1 = vector.shape_cast %0 : vector<1x8x32xf32> to vector<8x32xf32>
    %c0_2 = arith.constant 0 : index
    %c0_3 = arith.constant 0 : index
    %c0_4 = arith.constant 0 : index
    %2 = vector.load %arg2[%c0_2, %c0_3, %c0_4] : memref<1x8x32xf32, #tpu.memory_space<vmem>>, vector<1x8x32xf32>
    %3 = vector.shape_cast %2 : vector<1x8x32xf32> to vector<8x32xf32>
    %4 = arith.addf %1, %3 : vector<8x32xf32>
    %cst = arith.constant 0.000000e+00 : f32
    %5 = vector.broadcast %cst : f32 to vector<8x32xf32>
    %c0_5 = arith.constant 0 : index
    %c0_6 = arith.constant 0 : index
    %c0_7 = arith.constant 0 : index
    %6 = vector.load %arg3[%c0_5, %c0_6, %c0_7] : memref<4x32x8xf32, #tpu.memory_space<vmem>>, vector<1x32x8xf32>
    %7 = vector.shape_cast %6 : vector<1x32x8xf32> to vector<32x8xf32>
    %cst_8 = arith.constant dense<0.000000e+00> : vector<8x8xf32>
    %8 = tpu.matmul %4, %7, %cst_8 {dimension_numbers = #tpu.dot_dimension_numbers<[1], [0], [0], [1], [0, 0, 1, 1], [], []>} : vector<8x32xf32>, vector<32x8xf32>, vector<8x8xf32> -> vector<8x8xf32>
    %c0_9 = arith.constant 0 : index
    %c0_10 = arith.constant 0 : index
    %c0_11 = arith.constant 0 : index
    %9 = vector.load %arg4[%c0_9, %c0_10, %c0_11] : memref<4x1x8xf32, #tpu.memory_space<vmem>>, vector<1x1x8xf32>
    %10 = vector.shape_cast %9 : vector<1x1x8xf32> to vector<1x8xf32>
    %11 = vector.broadcast %10 : vector<1x8xf32> to vector<8x8xf32>
    %12 = arith.addf %8, %11 : vector<8x8xf32>
    %c0_12 = arith.constant 0 : index
    %c0_13 = arith.constant 0 : index
    %c0_14 = arith.constant 0 : index
    %13 = vector.load %arg5[%c0_12, %c0_13, %c0_14] : memref<4x32x8xf32, #tpu.memory_space<vmem>>, vector<1x32x8xf32>
    %14 = vector.shape_cast %13 : vector<1x32x8xf32> to vector<32x8xf32>
    %cst_15 = arith.constant dense<0.000000e+00> : vector<8x8xf32>
    %15 = tpu.matmul %4, %14, %cst_15 {dimension_numbers = #tpu.dot_dimension_numbers<[1], [0], [0], [1], [0, 0, 1, 1], [], []>} : vector<8x32xf32>, vector<32x8xf32>, vector<8x8xf32> -> vector<8x8xf32>
    %c0_16 = arith.constant 0 : index
    %c0_17 = arith.constant 0 : index
    %c0_18 = arith.constant 0 : index
    %16 = vector.load %arg6[%c0_16, %c0_17, %c0_18] : memref<4x1x8xf32, #tpu.memory_space<vmem>>, vector<1x1x8xf32>
    %17 = vector.shape_cast %16 : vector<1x1x8xf32> to vector<1x8xf32>
    %18 = vector.broadcast %17 : vector<1x8xf32> to vector<8x8xf32>
    %19 = arith.addf %15, %18 : vector<8x8xf32>
    %c0_19 = arith.constant 0 : index
    %c0_20 = arith.constant 0 : index
    %c0_21 = arith.constant 0 : index
    %20 = vector.load %arg7[%c0_19, %c0_20, %c0_21] : memref<4x32x8xf32, #tpu.memory_space<vmem>>, vector<1x32x8xf32>
    %21 = vector.shape_cast %20 : vector<1x32x8xf32> to vector<32x8xf32>
    %cst_22 = arith.constant dense<0.000000e+00> : vector<8x8xf32>
    %22 = tpu.matmul %1, %21, %cst_22 {dimension_numbers = #tpu.dot_dimension_numbers<[1], [0], [0], [1], [0, 0, 1, 1], [], []>} : vector<8x32xf32>, vector<32x8xf32>, vector<8x8xf32> -> vector<8x8xf32>
    %c0_23 = arith.constant 0 : index
    %c0_24 = arith.constant 0 : index
    %c0_25 = arith.constant 0 : index
    %23 = vector.load %arg8[%c0_23, %c0_24, %c0_25] : memref<4x1x8xf32, #tpu.memory_space<vmem>>, vector<1x1x8xf32>
    %24 = vector.shape_cast %23 : vector<1x1x8xf32> to vector<1x8xf32>
    %25 = vector.broadcast %24 : vector<1x8xf32> to vector<8x8xf32>
    %26 = arith.addf %22, %25 : vector<8x8xf32>
    %cst_26 = arith.constant dense<0.000000e+00> : vector<8x8xf32>
    %27 = tpu.matmul %12, %19, %cst_26 {dimension_numbers = #tpu.dot_dimension_numbers<[1], [1], [0], [0], [0, 0, 1, 0], [], []>} : vector<8x8xf32>, vector<8x8xf32>, vector<8x8xf32> -> vector<8x8xf32>
    %cst_27 = arith.constant 0.353553385 : f32
    %28 = vector.broadcast %cst_27 : f32 to vector<8x8xf32>
    %29 = arith.mulf %27, %28 : vector<8x8xf32>
    %cst_28 = arith.constant dense<0xFF800000> : vector<8xf32>
    %30 = vector.multi_reduction <maximumf>, %29, %cst_28 [1] : vector<8x8xf32> to vector<8xf32>
    %31 = vector.shape_cast %30 : vector<8xf32> to vector<8x1xf32>
    %32 = vector.broadcast %31 : vector<8x1xf32> to vector<8x8xf32>
    %33 = arith.subf %29, %32 : vector<8x8xf32>
    %34 = math.exp %33 : vector<8x8xf32>
    %cst_29 = arith.constant dense<0.000000e+00> : vector<8xf32>
    %35 = vector.multi_reduction <add>, %34, %cst_29 [1] : vector<8x8xf32> to vector<8xf32>
    %36 = vector.shape_cast %35 : vector<8xf32> to vector<8x1xf32>
    %37 = vector.broadcast %36 : vector<8x1xf32> to vector<8x8xf32>
    %38 = arith.divf %34, %37 : vector<8x8xf32>
    %cst_30 = arith.constant dense<0.000000e+00> : vector<8x8xf32>
    %39 = tpu.matmul %38, %26, %cst_30 {dimension_numbers = #tpu.dot_dimension_numbers<[1], [0], [0], [1], [0, 0, 1, 1], [], []>} : vector<8x8xf32>, vector<8x8xf32>, vector<8x8xf32> -> vector<8x8xf32>
    %c0_31 = arith.constant 0 : index
    %c0_32 = arith.constant 0 : index
    %c0_33 = arith.constant 0 : index
    %40 = vector.load %arg9[%c0_31, %c0_32, %c0_33] : memref<4x8x32xf32, #tpu.memory_space<vmem>>, vector<1x8x32xf32>
    %41 = vector.shape_cast %40 : vector<1x8x32xf32> to vector<8x32xf32>
    %cst_34 = arith.constant dense<0.000000e+00> : vector<8x32xf32>
    %42 = tpu.matmul %39, %41, %cst_34 {dimension_numbers = #tpu.dot_dimension_numbers<[1], [0], [0], [1], [0, 0, 1, 1], [], []>} : vector<8x8xf32>, vector<8x32xf32>, vector<8x32xf32> -> vector<8x32xf32>
    %43 = arith.addf %5, %42 : vector<8x32xf32>
    %c1 = arith.constant 1 : index
    %c0_35 = arith.constant 0 : index
    %c0_36 = arith.constant 0 : index
    %44 = vector.load %arg3[%c1, %c0_35, %c0_36] : memref<4x32x8xf32, #tpu.memory_space<vmem>>, vector<1x32x8xf32>
    %45 = vector.shape_cast %44 : vector<1x32x8xf32> to vector<32x8xf32>
    %cst_37 = arith.constant dense<0.000000e+00> : vector<8x8xf32>
    %46 = tpu.matmul %4, %45, %cst_37 {dimension_numbers = #tpu.dot_dimension_numbers<[1], [0], [0], [1], [0, 0, 1, 1], [], []>} : vector<8x32xf32>, vector<32x8xf32>, vector<8x8xf32> -> vector<8x8xf32>
    %c1_38 = arith.constant 1 : index
    %c0_39 = arith.constant 0 : index
    %c0_40 = arith.constant 0 : index
    %47 = vector.load %arg4[%c1_38, %c0_39, %c0_40] : memref<4x1x8xf32, #tpu.memory_space<vmem>>, vector<1x1x8xf32>
    %48 = vector.shape_cast %47 : vector<1x1x8xf32> to vector<1x8xf32>
    %49 = vector.broadcast %48 : vector<1x8xf32> to vector<8x8xf32>
    %50 = arith.addf %46, %49 : vector<8x8xf32>
    %c1_41 = arith.constant 1 : index
    %c0_42 = arith.constant 0 : index
    %c0_43 = arith.constant 0 : index
    %51 = vector.load %arg5[%c1_41, %c0_42, %c0_43] : memref<4x32x8xf32, #tpu.memory_space<vmem>>, vector<1x32x8xf32>
    %52 = vector.shape_cast %51 : vector<1x32x8xf32> to vector<32x8xf32>
    %cst_44 = arith.constant dense<0.000000e+00> : vector<8x8xf32>
    %53 = tpu.matmul %4, %52, %cst_44 {dimension_numbers = #tpu.dot_dimension_numbers<[1], [0], [0], [1], [0, 0, 1, 1], [], []>} : vector<8x32xf32>, vector<32x8xf32>, vector<8x8xf32> -> vector<8x8xf32>
    %c1_45 = arith.constant 1 : index
    %c0_46 = arith.constant 0 : index
    %c0_47 = arith.constant 0 : index
    %54 = vector.load %arg6[%c1_45, %c0_46, %c0_47] : memref<4x1x8xf32, #tpu.memory_space<vmem>>, vector<1x1x8xf32>
    %55 = vector.shape_cast %54 : vector<1x1x8xf32> to vector<1x8xf32>
    %56 = vector.broadcast %55 : vector<1x8xf32> to vector<8x8xf32>
    %57 = arith.addf %53, %56 : vector<8x8xf32>
    %c1_48 = arith.constant 1 : index
    %c0_49 = arith.constant 0 : index
    %c0_50 = arith.constant 0 : index
    %58 = vector.load %arg7[%c1_48, %c0_49, %c0_50] : memref<4x32x8xf32, #tpu.memory_space<vmem>>, vector<1x32x8xf32>
    %59 = vector.shape_cast %58 : vector<1x32x8xf32> to vector<32x8xf32>
    %cst_51 = arith.constant dense<0.000000e+00> : vector<8x8xf32>
    %60 = tpu.matmul %1, %59, %cst_51 {dimension_numbers = #tpu.dot_dimension_numbers<[1], [0], [0], [1], [0, 0, 1, 1], [], []>} : vector<8x32xf32>, vector<32x8xf32>, vector<8x8xf32> -> vector<8x8xf32>
    %c1_52 = arith.constant 1 : index
    %c0_53 = arith.constant 0 : index
    %c0_54 = arith.constant 0 : index
    %61 = vector.load %arg8[%c1_52, %c0_53, %c0_54] : memref<4x1x8xf32, #tpu.memory_space<vmem>>, vector<1x1x8xf32>
    %62 = vector.shape_cast %61 : vector<1x1x8xf32> to vector<1x8xf32>
    %63 = vector.broadcast %62 : vector<1x8xf32> to vector<8x8xf32>
    %64 = arith.addf %60, %63 : vector<8x8xf32>
    %cst_55 = arith.constant dense<0.000000e+00> : vector<8x8xf32>
    %65 = tpu.matmul %50, %57, %cst_55 {dimension_numbers = #tpu.dot_dimension_numbers<[1], [1], [0], [0], [0, 0, 1, 0], [], []>} : vector<8x8xf32>, vector<8x8xf32>, vector<8x8xf32> -> vector<8x8xf32>
    %cst_56 = arith.constant 0.353553385 : f32
    %66 = vector.broadcast %cst_56 : f32 to vector<8x8xf32>
    %67 = arith.mulf %65, %66 : vector<8x8xf32>
    %cst_57 = arith.constant dense<0xFF800000> : vector<8xf32>
    %68 = vector.multi_reduction <maximumf>, %67, %cst_57 [1] : vector<8x8xf32> to vector<8xf32>
    %69 = vector.shape_cast %68 : vector<8xf32> to vector<8x1xf32>
    %70 = vector.broadcast %69 : vector<8x1xf32> to vector<8x8xf32>
    %71 = arith.subf %67, %70 : vector<8x8xf32>
    %72 = math.exp %71 : vector<8x8xf32>
    %cst_58 = arith.constant dense<0.000000e+00> : vector<8xf32>
    %73 = vector.multi_reduction <add>, %72, %cst_58 [1] : vector<8x8xf32> to vector<8xf32>
    %74 = vector.shape_cast %73 : vector<8xf32> to vector<8x1xf32>
    %75 = vector.broadcast %74 : vector<8x1xf32> to vector<8x8xf32>
    %76 = arith.divf %72, %75 : vector<8x8xf32>
    %cst_59 = arith.constant dense<0.000000e+00> : vector<8x8xf32>
    %77 = tpu.matmul %76, %64, %cst_59 {dimension_numbers = #tpu.dot_dimension_numbers<[1], [0], [0], [1], [0, 0, 1, 1], [], []>} : vector<8x8xf32>, vector<8x8xf32>, vector<8x8xf32> -> vector<8x8xf32>
    %c1_60 = arith.constant 1 : index
    %c0_61 = arith.constant 0 : index
    %c0_62 = arith.constant 0 : index
    %78 = vector.load %arg9[%c1_60, %c0_61, %c0_62] : memref<4x8x32xf32, #tpu.memory_space<vmem>>, vector<1x8x32xf32>
    %79 = vector.shape_cast %78 : vector<1x8x32xf32> to vector<8x32xf32>
    %cst_63 = arith.constant dense<0.000000e+00> : vector<8x32xf32>
    %80 = tpu.matmul %77, %79, %cst_63 {dimension_numbers = #tpu.dot_dimension_numbers<[1], [0], [0], [1], [0, 0, 1, 1], [], []>} : vector<8x8xf32>, vector<8x32xf32>, vector<8x32xf32> -> vector<8x32xf32>
    %81 = arith.addf %43, %80 : vector<8x32xf32>
    %c2 = arith.constant 2 : index
    %c0_64 = arith.constant 0 : index
    %c0_65 = arith.constant 0 : index
    %82 = vector.load %arg3[%c2, %c0_64, %c0_65] : memref<4x32x8xf32, #tpu.memory_space<vmem>>, vector<1x32x8xf32>
    %83 = vector.shape_cast %82 : vector<1x32x8xf32> to vector<32x8xf32>
    %cst_66 = arith.constant dense<0.000000e+00> : vector<8x8xf32>
    %84 = tpu.matmul %4, %83, %cst_66 {dimension_numbers = #tpu.dot_dimension_numbers<[1], [0], [0], [1], [0, 0, 1, 1], [], []>} : vector<8x32xf32>, vector<32x8xf32>, vector<8x8xf32> -> vector<8x8xf32>
    %c2_67 = arith.constant 2 : index
    %c0_68 = arith.constant 0 : index
    %c0_69 = arith.constant 0 : index
    %85 = vector.load %arg4[%c2_67, %c0_68, %c0_69] : memref<4x1x8xf32, #tpu.memory_space<vmem>>, vector<1x1x8xf32>
    %86 = vector.shape_cast %85 : vector<1x1x8xf32> to vector<1x8xf32>
    %87 = vector.broadcast %86 : vector<1x8xf32> to vector<8x8xf32>
    %88 = arith.addf %84, %87 : vector<8x8xf32>
    %c2_70 = arith.constant 2 : index
    %c0_71 = arith.constant 0 : index
    %c0_72 = arith.constant 0 : index
    %89 = vector.load %arg5[%c2_70, %c0_71, %c0_72] : memref<4x32x8xf32, #tpu.memory_space<vmem>>, vector<1x32x8xf32>
    %90 = vector.shape_cast %89 : vector<1x32x8xf32> to vector<32x8xf32>
    %cst_73 = arith.constant dense<0.000000e+00> : vector<8x8xf32>
    %91 = tpu.matmul %4, %90, %cst_73 {dimension_numbers = #tpu.dot_dimension_numbers<[1], [0], [0], [1], [0, 0, 1, 1], [], []>} : vector<8x32xf32>, vector<32x8xf32>, vector<8x8xf32> -> vector<8x8xf32>
    %c2_74 = arith.constant 2 : index
    %c0_75 = arith.constant 0 : index
    %c0_76 = arith.constant 0 : index
    %92 = vector.load %arg6[%c2_74, %c0_75, %c0_76] : memref<4x1x8xf32, #tpu.memory_space<vmem>>, vector<1x1x8xf32>
    %93 = vector.shape_cast %92 : vector<1x1x8xf32> to vector<1x8xf32>
    %94 = vector.broadcast %93 : vector<1x8xf32> to vector<8x8xf32>
    %95 = arith.addf %91, %94 : vector<8x8xf32>
    %c2_77 = arith.constant 2 : index
    %c0_78 = arith.constant 0 : index
    %c0_79 = arith.constant 0 : index
    %96 = vector.load %arg7[%c2_77, %c0_78, %c0_79] : memref<4x32x8xf32, #tpu.memory_space<vmem>>, vector<1x32x8xf32>
    %97 = vector.shape_cast %96 : vector<1x32x8xf32> to vector<32x8xf32>
    %cst_80 = arith.constant dense<0.000000e+00> : vector<8x8xf32>
    %98 = tpu.matmul %1, %97, %cst_80 {dimension_numbers = #tpu.dot_dimension_numbers<[1], [0], [0], [1], [0, 0, 1, 1], [], []>} : vector<8x32xf32>, vector<32x8xf32>, vector<8x8xf32> -> vector<8x8xf32>
    %c2_81 = arith.constant 2 : index
    %c0_82 = arith.constant 0 : index
    %c0_83 = arith.constant 0 : index
    %99 = vector.load %arg8[%c2_81, %c0_82, %c0_83] : memref<4x1x8xf32, #tpu.memory_space<vmem>>, vector<1x1x8xf32>
    %100 = vector.shape_cast %99 : vector<1x1x8xf32> to vector<1x8xf32>
    %101 = vector.broadcast %100 : vector<1x8xf32> to vector<8x8xf32>
    %102 = arith.addf %98, %101 : vector<8x8xf32>
    %cst_84 = arith.constant dense<0.000000e+00> : vector<8x8xf32>
    %103 = tpu.matmul %88, %95, %cst_84 {dimension_numbers = #tpu.dot_dimension_numbers<[1], [1], [0], [0], [0, 0, 1, 0], [], []>} : vector<8x8xf32>, vector<8x8xf32>, vector<8x8xf32> -> vector<8x8xf32>
    %cst_85 = arith.constant 0.353553385 : f32
    %104 = vector.broadcast %cst_85 : f32 to vector<8x8xf32>
    %105 = arith.mulf %103, %104 : vector<8x8xf32>
    %cst_86 = arith.constant dense<0xFF800000> : vector<8xf32>
    %106 = vector.multi_reduction <maximumf>, %105, %cst_86 [1] : vector<8x8xf32> to vector<8xf32>
    %107 = vector.shape_cast %106 : vector<8xf32> to vector<8x1xf32>
    %108 = vector.broadcast %107 : vector<8x1xf32> to vector<8x8xf32>
    %109 = arith.subf %105, %108 : vector<8x8xf32>
    %110 = math.exp %109 : vector<8x8xf32>
    %cst_87 = arith.constant dense<0.000000e+00> : vector<8xf32>
    %111 = vector.multi_reduction <add>, %110, %cst_87 [1] : vector<8x8xf32> to vector<8xf32>
    %112 = vector.shape_cast %111 : vector<8xf32> to vector<8x1xf32>
    %113 = vector.broadcast %112 : vector<8x1xf32> to vector<8x8xf32>
    %114 = arith.divf %110, %113 : vector<8x8xf32>
    %cst_88 = arith.constant dense<0.000000e+00> : vector<8x8xf32>
    %115 = tpu.matmul %114, %102, %cst_88 {dimension_numbers = #tpu.dot_dimension_numbers<[1], [0], [0], [1], [0, 0, 1, 1], [], []>} : vector<8x8xf32>, vector<8x8xf32>, vector<8x8xf32> -> vector<8x8xf32>
    %c2_89 = arith.constant 2 : index
    %c0_90 = arith.constant 0 : index
    %c0_91 = arith.constant 0 : index
    %116 = vector.load %arg9[%c2_89, %c0_90, %c0_91] : memref<4x8x32xf32, #tpu.memory_space<vmem>>, vector<1x8x32xf32>
    %117 = vector.shape_cast %116 : vector<1x8x32xf32> to vector<8x32xf32>
    %cst_92 = arith.constant dense<0.000000e+00> : vector<8x32xf32>
    %118 = tpu.matmul %115, %117, %cst_92 {dimension_numbers = #tpu.dot_dimension_numbers<[1], [0], [0], [1], [0, 0, 1, 1], [], []>} : vector<8x8xf32>, vector<8x32xf32>, vector<8x32xf32> -> vector<8x32xf32>
    %119 = arith.addf %81, %118 : vector<8x32xf32>
    %c3 = arith.constant 3 : index
    %c0_93 = arith.constant 0 : index
    %c0_94 = arith.constant 0 : index
    %120 = vector.load %arg3[%c3, %c0_93, %c0_94] : memref<4x32x8xf32, #tpu.memory_space<vmem>>, vector<1x32x8xf32>
    %121 = vector.shape_cast %120 : vector<1x32x8xf32> to vector<32x8xf32>
    %cst_95 = arith.constant dense<0.000000e+00> : vector<8x8xf32>
    %122 = tpu.matmul %4, %121, %cst_95 {dimension_numbers = #tpu.dot_dimension_numbers<[1], [0], [0], [1], [0, 0, 1, 1], [], []>} : vector<8x32xf32>, vector<32x8xf32>, vector<8x8xf32> -> vector<8x8xf32>
    %c3_96 = arith.constant 3 : index
    %c0_97 = arith.constant 0 : index
    %c0_98 = arith.constant 0 : index
    %123 = vector.load %arg4[%c3_96, %c0_97, %c0_98] : memref<4x1x8xf32, #tpu.memory_space<vmem>>, vector<1x1x8xf32>
    %124 = vector.shape_cast %123 : vector<1x1x8xf32> to vector<1x8xf32>
    %125 = vector.broadcast %124 : vector<1x8xf32> to vector<8x8xf32>
    %126 = arith.addf %122, %125 : vector<8x8xf32>
    %c3_99 = arith.constant 3 : index
    %c0_100 = arith.constant 0 : index
    %c0_101 = arith.constant 0 : index
    %127 = vector.load %arg5[%c3_99, %c0_100, %c0_101] : memref<4x32x8xf32, #tpu.memory_space<vmem>>, vector<1x32x8xf32>
    %128 = vector.shape_cast %127 : vector<1x32x8xf32> to vector<32x8xf32>
    %cst_102 = arith.constant dense<0.000000e+00> : vector<8x8xf32>
    %129 = tpu.matmul %4, %128, %cst_102 {dimension_numbers = #tpu.dot_dimension_numbers<[1], [0], [0], [1], [0, 0, 1, 1], [], []>} : vector<8x32xf32>, vector<32x8xf32>, vector<8x8xf32> -> vector<8x8xf32>
    %c3_103 = arith.constant 3 : index
    %c0_104 = arith.constant 0 : index
    %c0_105 = arith.constant 0 : index
    %130 = vector.load %arg6[%c3_103, %c0_104, %c0_105] : memref<4x1x8xf32, #tpu.memory_space<vmem>>, vector<1x1x8xf32>
    %131 = vector.shape_cast %130 : vector<1x1x8xf32> to vector<1x8xf32>
    %132 = vector.broadcast %131 : vector<1x8xf32> to vector<8x8xf32>
    %133 = arith.addf %129, %132 : vector<8x8xf32>
    %c3_106 = arith.constant 3 : index
    %c0_107 = arith.constant 0 : index
    %c0_108 = arith.constant 0 : index
    %134 = vector.load %arg7[%c3_106, %c0_107, %c0_108] : memref<4x32x8xf32, #tpu.memory_space<vmem>>, vector<1x32x8xf32>
    %135 = vector.shape_cast %134 : vector<1x32x8xf32> to vector<32x8xf32>
    %cst_109 = arith.constant dense<0.000000e+00> : vector<8x8xf32>
    %136 = tpu.matmul %1, %135, %cst_109 {dimension_numbers = #tpu.dot_dimension_numbers<[1], [0], [0], [1], [0, 0, 1, 1], [], []>} : vector<8x32xf32>, vector<32x8xf32>, vector<8x8xf32> -> vector<8x8xf32>
    %c3_110 = arith.constant 3 : index
    %c0_111 = arith.constant 0 : index
    %c0_112 = arith.constant 0 : index
    %137 = vector.load %arg8[%c3_110, %c0_111, %c0_112] : memref<4x1x8xf32, #tpu.memory_space<vmem>>, vector<1x1x8xf32>
    %138 = vector.shape_cast %137 : vector<1x1x8xf32> to vector<1x8xf32>
    %139 = vector.broadcast %138 : vector<1x8xf32> to vector<8x8xf32>
    %140 = arith.addf %136, %139 : vector<8x8xf32>
    %cst_113 = arith.constant dense<0.000000e+00> : vector<8x8xf32>
    %141 = tpu.matmul %126, %133, %cst_113 {dimension_numbers = #tpu.dot_dimension_numbers<[1], [1], [0], [0], [0, 0, 1, 0], [], []>} : vector<8x8xf32>, vector<8x8xf32>, vector<8x8xf32> -> vector<8x8xf32>
    %cst_114 = arith.constant 0.353553385 : f32
    %142 = vector.broadcast %cst_114 : f32 to vector<8x8xf32>
    %143 = arith.mulf %141, %142 : vector<8x8xf32>
    %cst_115 = arith.constant dense<0xFF800000> : vector<8xf32>
    %144 = vector.multi_reduction <maximumf>, %143, %cst_115 [1] : vector<8x8xf32> to vector<8xf32>
    %145 = vector.shape_cast %144 : vector<8xf32> to vector<8x1xf32>
    %146 = vector.broadcast %145 : vector<8x1xf32> to vector<8x8xf32>
    %147 = arith.subf %143, %146 : vector<8x8xf32>
    %148 = math.exp %147 : vector<8x8xf32>
    %cst_116 = arith.constant dense<0.000000e+00> : vector<8xf32>
    %149 = vector.multi_reduction <add>, %148, %cst_116 [1] : vector<8x8xf32> to vector<8xf32>
    %150 = vector.shape_cast %149 : vector<8xf32> to vector<8x1xf32>
    %151 = vector.broadcast %150 : vector<8x1xf32> to vector<8x8xf32>
    %152 = arith.divf %148, %151 : vector<8x8xf32>
    %cst_117 = arith.constant dense<0.000000e+00> : vector<8x8xf32>
    %153 = tpu.matmul %152, %140, %cst_117 {dimension_numbers = #tpu.dot_dimension_numbers<[1], [0], [0], [1], [0, 0, 1, 1], [], []>} : vector<8x8xf32>, vector<8x8xf32>, vector<8x8xf32> -> vector<8x8xf32>
    %c3_118 = arith.constant 3 : index
    %c0_119 = arith.constant 0 : index
    %c0_120 = arith.constant 0 : index
    %154 = vector.load %arg9[%c3_118, %c0_119, %c0_120] : memref<4x8x32xf32, #tpu.memory_space<vmem>>, vector<1x8x32xf32>
    %155 = vector.shape_cast %154 : vector<1x8x32xf32> to vector<8x32xf32>
    %cst_121 = arith.constant dense<0.000000e+00> : vector<8x32xf32>
    %156 = tpu.matmul %153, %155, %cst_121 {dimension_numbers = #tpu.dot_dimension_numbers<[1], [0], [0], [1], [0, 0, 1, 1], [], []>} : vector<8x8xf32>, vector<8x32xf32>, vector<8x32xf32> -> vector<8x32xf32>
    %157 = arith.addf %119, %156 : vector<8x32xf32>
    %158 = arith.addf %1, %157 : vector<8x32xf32>
    %c0_122 = arith.constant 0 : index
    %c0_123 = arith.constant 0 : index
    %159 = vector.load %arg10[%c0_122, %c0_123] : memref<1x32xf32, #tpu.memory_space<vmem>>, vector<1x32xf32>
    %160 = vector.broadcast %159 : vector<1x32xf32> to vector<8x32xf32>
    %161 = arith.addf %158, %160 : vector<8x32xf32>
    %cst_124 = arith.constant dense<0.000000e+00> : vector<8xf32>
    %162 = vector.multi_reduction <add>, %161, %cst_124 [1] : vector<8x32xf32> to vector<8xf32>
    %163 = vector.shape_cast %162 : vector<8xf32> to vector<8x1xf32>
    %cst_125 = arith.constant 3.200000e+01 : f32
    %164 = vector.broadcast %cst_125 : f32 to vector<8x1xf32>
    %165 = arith.divf %163, %164 : vector<8x1xf32>
    %166 = vector.broadcast %165 : vector<8x1xf32> to vector<8x32xf32>
    %167 = arith.subf %161, %166 : vector<8x32xf32>
    %168 = arith.mulf %167, %167 : vector<8x32xf32>
    %cst_126 = arith.constant dense<0.000000e+00> : vector<8xf32>
    %169 = vector.multi_reduction <add>, %168, %cst_126 [1] : vector<8x32xf32> to vector<8xf32>
    %170 = vector.shape_cast %169 : vector<8xf32> to vector<8x1xf32>
    %cst_127 = arith.constant 3.200000e+01 : f32
    %171 = vector.broadcast %cst_127 : f32 to vector<8x1xf32>
    %172 = arith.divf %170, %171 : vector<8x1xf32>
    %cst_128 = arith.constant 9.99999974E-6 : f32
    %173 = vector.broadcast %cst_128 : f32 to vector<8x1xf32>
    %174 = arith.addf %172, %173 : vector<8x1xf32>
    %175 = math.rsqrt %174 : vector<8x1xf32>
    %176 = vector.broadcast %175 : vector<8x1xf32> to vector<8x32xf32>
    %177 = arith.mulf %167, %176 : vector<8x32xf32>
    %c0_129 = arith.constant 0 : index
    %c0_130 = arith.constant 0 : index
    %178 = vector.load %arg11[%c0_129, %c0_130] : memref<1x32xf32, #tpu.memory_space<vmem>>, vector<1x32xf32>
    %179 = vector.broadcast %178 : vector<1x32xf32> to vector<8x32xf32>
    %180 = arith.mulf %177, %179 : vector<8x32xf32>
    %c0_131 = arith.constant 0 : index
    %c0_132 = arith.constant 0 : index
    %181 = vector.load %arg12[%c0_131, %c0_132] : memref<1x32xf32, #tpu.memory_space<vmem>>, vector<1x32xf32>
    %182 = vector.broadcast %181 : vector<1x32xf32> to vector<8x32xf32>
    %183 = arith.addf %180, %182 : vector<8x32xf32>
    %c0_133 = arith.constant 0 : index
    %c0_134 = arith.constant 0 : index
    %c0_135 = arith.constant 0 : index
    %184 = vector.load %arg18[%c0_133, %c0_134, %c0_135] : memref<1x8x32xf32, #tpu.memory_space<vmem>>, vector<1x8x32xf32>
    %185 = vector.shape_cast %184 : vector<1x8x32xf32> to vector<8x32xf32>
    %186 = vector.shape_cast %183 : vector<8x32xf32> to vector<1x8x32xf32>
    tpu.vector_store %arg18[%c0_133, %c0_134, %c0_135], %186 {strides = array<i32>} : memref<1x8x32xf32, #tpu.memory_space<vmem>>, vector<1x8x32xf32>,
    %c0_136 = arith.constant 0 : index
    %c0_137 = arith.constant 0 : index
    %187 = vector.load %arg13[%c0_136, %c0_137] : memref<32x32xf32, #tpu.memory_space<vmem>>, vector<32x32xf32>
    %cst_138 = arith.constant dense<0.000000e+00> : vector<8x32xf32>
    %188 = tpu.matmul %183, %187, %cst_138 {dimension_numbers = #tpu.dot_dimension_numbers<[1], [0], [0], [1], [0, 0, 1, 1], [], []>} : vector<8x32xf32>, vector<32x32xf32>, vector<8x32xf32> -> vector<8x32xf32>
    %c0_139 = arith.constant 0 : index
    %c0_140 = arith.constant 0 : index
    %189 = vector.load %arg14[%c0_139, %c0_140] : memref<1x32xf32, #tpu.memory_space<vmem>>, vector<1x32xf32>
    %190 = vector.broadcast %189 : vector<1x32xf32> to vector<8x32xf32>
    %191 = arith.addf %188, %190 : vector<8x32xf32>
    %c0_141 = arith.constant 0 : index
    %c0_142 = arith.constant 0 : index
    %c0_143 = arith.constant 0 : index
    %192 = vector.load %arg19[%c0_141, %c0_142, %c0_143] : memref<1x8x32xf32, #tpu.memory_space<vmem>>, vector<1x8x32xf32>
    %193 = vector.shape_cast %192 : vector<1x8x32xf32> to vector<8x32xf32>
    %194 = vector.shape_cast %191 : vector<8x32xf32> to vector<1x8x32xf32>
    tpu.vector_store %arg19[%c0_141, %c0_142, %c0_143], %194 {strides = array<i32>} : memref<1x8x32xf32, #tpu.memory_space<vmem>>, vector<1x8x32xf32>,
    %c0_144 = arith.constant 0 : index
    %c0_145 = arith.constant 0 : index
    %195 = vector.load %arg15[%c0_144, %c0_145] : memref<32x16xf32, #tpu.memory_space<vmem>>, vector<32x16xf32>
    %cst_146 = arith.constant dense<0.000000e+00> : vector<8x16xf32>
    %196 = tpu.matmul %183, %195, %cst_146 {dimension_numbers = #tpu.dot_dimension_numbers<[1], [0], [0], [1], [0, 0, 1, 1], [], []>} : vector<8x32xf32>, vector<32x16xf32>, vector<8x16xf32> -> vector<8x16xf32>
    %c0_147 = arith.constant 0 : index
    %c0_148 = arith.constant 0 : index
    %197 = vector.load %arg16[%c0_147, %c0_148] : memref<1x16xf32, #tpu.memory_space<vmem>>, vector<1x16xf32>
    %198 = vector.broadcast %197 : vector<1x16xf32> to vector<8x16xf32>
    %199 = arith.addf %196, %198 : vector<8x16xf32>
    %cst_149 = arith.constant dense<0xFF800000> : vector<8xf32>
    %200 = vector.multi_reduction <maximumf>, %199, %cst_149 [1] : vector<8x16xf32> to vector<8xf32>
    %201 = vector.shape_cast %200 : vector<8xf32> to vector<8x1xf32>
    %202 = vector.broadcast %201 : vector<8x1xf32> to vector<8x16xf32>
    %203 = arith.subf %199, %202 : vector<8x16xf32>
    %204 = math.exp %203 : vector<8x16xf32>
    %c0_150 = arith.constant 0 : index
    %c0_151 = arith.constant 0 : index
    %205 = vector.load %arg17[%c0_150, %c0_151] : memref<16x16xf32, #tpu.memory_space<vmem>>, vector<16x16xf32>
    %cst_152 = arith.constant dense<0.000000e+00> : vector<8x16xf32>
    %206 = tpu.matmul %204, %205, %cst_152 {dimension_numbers = #tpu.dot_dimension_numbers<[1], [0], [0], [1], [0, 0, 1, 1], [], []>} : vector<8x16xf32>, vector<16x16xf32>, vector<8x16xf32> -> vector<8x16xf32>
    %207 = arith.divf %204, %206 : vector<8x16xf32>
    %c0_153 = arith.constant 0 : index
    %c0_154 = arith.constant 0 : index
    %c0_155 = arith.constant 0 : index
    %208 = vector.load %arg20[%c0_153, %c0_154, %c0_155] : memref<1x8x16xf32, #tpu.memory_space<vmem>>, vector<1x8x16xf32>
    %209 = vector.shape_cast %208 : vector<1x8x16xf32> to vector<8x16xf32>
    %210 = vector.shape_cast %207 : vector<8x16xf32> to vector<1x8x16xf32>
    tpu.vector_store %arg20[%c0_153, %c0_154, %c0_155], %210 {strides = array<i32>} : memref<1x8x16xf32, #tpu.memory_space<vmem>>, vector<1x8x16xf32>,
    return
  }
  func.func @transform_0(%arg0: i32) -> (i32, i32, i32) {
    %c0_i32 = arith.constant 0 : i32
    %c0_i32_0 = arith.constant 0 : i32
    %c0_i32_1 = arith.constant 0 : i32
    return %arg0, %c0_i32, %c0_i32_0 : i32, i32, i32
  }
  func.func @transform_1(%arg0: i32) -> (i32, i32, i32) {
    %c0_i32 = arith.constant 0 : i32
    %c0_i32_0 = arith.constant 0 : i32
    %c0_i32_1 = arith.constant 0 : i32
    return %arg0, %c0_i32, %c0_i32_0 : i32, i32, i32
  }
  func.func @transform_2(%arg0: i32) -> (i32, i32, i32) {
    %c0_i32 = arith.constant 0 : i32
    %c0_i32_0 = arith.constant 0 : i32
    %c0_i32_1 = arith.constant 0 : i32
    %c0_i32_2 = arith.constant 0 : i32
    return %c0_i32, %c0_i32_0, %c0_i32_1 : i32, i32, i32
  }
  func.func @transform_3(%arg0: i32) -> (i32, i32, i32) {
    %c0_i32 = arith.constant 0 : i32
    %c0_i32_0 = arith.constant 0 : i32
    %c0_i32_1 = arith.constant 0 : i32
    %c0_i32_2 = arith.constant 0 : i32
    return %c0_i32, %c0_i32_0, %c0_i32_1 : i32, i32, i32
  }
  func.func @transform_4(%arg0: i32) -> (i32, i32, i32) {
    %c0_i32 = arith.constant 0 : i32
    %c0_i32_0 = arith.constant 0 : i32
    %c0_i32_1 = arith.constant 0 : i32
    %c0_i32_2 = arith.constant 0 : i32
    return %c0_i32, %c0_i32_0, %c0_i32_1 : i32, i32, i32
  }
  func.func @transform_5(%arg0: i32) -> (i32, i32, i32) {
    %c0_i32 = arith.constant 0 : i32
    %c0_i32_0 = arith.constant 0 : i32
    %c0_i32_1 = arith.constant 0 : i32
    %c0_i32_2 = arith.constant 0 : i32
    return %c0_i32, %c0_i32_0, %c0_i32_1 : i32, i32, i32
  }
  func.func @transform_6(%arg0: i32) -> (i32, i32, i32) {
    %c0_i32 = arith.constant 0 : i32
    %c0_i32_0 = arith.constant 0 : i32
    %c0_i32_1 = arith.constant 0 : i32
    %c0_i32_2 = arith.constant 0 : i32
    return %c0_i32, %c0_i32_0, %c0_i32_1 : i32, i32, i32
  }
  func.func @transform_7(%arg0: i32) -> (i32, i32, i32) {
    %c0_i32 = arith.constant 0 : i32
    %c0_i32_0 = arith.constant 0 : i32
    %c0_i32_1 = arith.constant 0 : i32
    %c0_i32_2 = arith.constant 0 : i32
    return %c0_i32, %c0_i32_0, %c0_i32_1 : i32, i32, i32
  }
  func.func @transform_8(%arg0: i32) -> (i32, i32, i32) {
    %c0_i32 = arith.constant 0 : i32
    %c0_i32_0 = arith.constant 0 : i32
    %c0_i32_1 = arith.constant 0 : i32
    %c0_i32_2 = arith.constant 0 : i32
    return %c0_i32, %c0_i32_0, %c0_i32_1 : i32, i32, i32
  }
  func.func @transform_9(%arg0: i32) -> (i32, i32) {
    %c0_i32 = arith.constant 0 : i32
    %c0_i32_0 = arith.constant 0 : i32
    %c0_i32_1 = arith.constant 0 : i32
    return %c0_i32, %c0_i32_0 : i32, i32
  }
  func.func @transform_10(%arg0: i32) -> (i32, i32) {
    %c0_i32 = arith.constant 0 : i32
    %c0_i32_0 = arith.constant 0 : i32
    %c0_i32_1 = arith.constant 0 : i32
    return %c0_i32, %c0_i32_0 : i32, i32
  }
  func.func @transform_11(%arg0: i32) -> (i32, i32) {
    %c0_i32 = arith.constant 0 : i32
    %c0_i32_0 = arith.constant 0 : i32
    %c0_i32_1 = arith.constant 0 : i32
    return %c0_i32, %c0_i32_0 : i32, i32
  }
  func.func @transform_12(%arg0: i32) -> (i32, i32) {
    %c0_i32 = arith.constant 0 : i32
    %c0_i32_0 = arith.constant 0 : i32
    %c0_i32_1 = arith.constant 0 : i32
    return %c0_i32, %c0_i32_0 : i32, i32
  }
  func.func @transform_13(%arg0: i32) -> (i32, i32) {
    %c0_i32 = arith.constant 0 : i32
    %c0_i32_0 = arith.constant 0 : i32
    %c0_i32_1 = arith.constant 0 : i32
    return %c0_i32, %c0_i32_0 : i32, i32
  }
  func.func @transform_14(%arg0: i32) -> (i32, i32) {
    %c0_i32 = arith.constant 0 : i32
    %c0_i32_0 = arith.constant 0 : i32
    %c0_i32_1 = arith.constant 0 : i32
    return %c0_i32, %c0_i32_0 : i32, i32
  }
  func.func @transform_15(%arg0: i32) -> (i32, i32) {
    %c0_i32 = arith.constant 0 : i32
    %c0_i32_0 = arith.constant 0 : i32
    %c0_i32_1 = arith.constant 0 : i32
    return %c0_i32, %c0_i32_0 : i32, i32
  }
  func.func @transform_16(%arg0: i32) -> (i32, i32) {
    %c0_i32 = arith.constant 0 : i32
    %c0_i32_0 = arith.constant 0 : i32
    %c0_i32_1 = arith.constant 0 : i32
    return %c0_i32, %c0_i32_0 : i32, i32
  }
  func.func @transform_17(%arg0: i32) -> (i32, i32, i32) {
    %c0_i32 = arith.constant 0 : i32
    %c0_i32_0 = arith.constant 0 : i32
    %c0_i32_1 = arith.constant 0 : i32
    return %arg0, %c0_i32, %c0_i32_0 : i32, i32, i32
  }
  func.func @transform_18(%arg0: i32) -> (i32, i32, i32) {
    %c0_i32 = arith.constant 0 : i32
    %c0_i32_0 = arith.constant 0 : i32
    %c0_i32_1 = arith.constant 0 : i32
    return %arg0, %c0_i32, %c0_i32_0 : i32, i32, i32
  }
  func.func @transform_19(%arg0: i32) -> (i32, i32, i32) {
    %c0_i32 = arith.constant 0 : i32
    %c0_i32_0 = arith.constant 0 : i32
    %c0_i32_1 = arith.constant 0 : i32
    return %arg0, %c0_i32, %c0_i32_0 : i32, i32, i32
  }
}

module attributes {stable_mosaic.version = 11 : i64} {
  func.func @_value_proj_kernel(%arg0: i32, %arg1: memref<1x80x32xf32, #tpu.memory_space<vmem>>, %arg2: memref<32x64xf32, #tpu.memory_space<vmem>>, %arg3: memref<1x64xf32, #tpu.memory_space<vmem>>, %arg4: memref<1x80x64xf32, #tpu.memory_space<vmem>>) attributes {dimension_semantics = [#tpu.dimension_semantics<parallel>], iteration_bounds = array<i64: 2>, scalar_prefetch = 0 : i64, scratch_operands = 0 : i64, tpu.core_type = #tpu.core_type<tc>, window_params = [{transform_indices = @transform_0, window_bounds = array<i64: 1, 80, 32>}, {pipeline_mode = #tpu.pipeline_mode<synchronous>, transform_indices = @transform_1, window_bounds = array<i64: 32, 64>}, {pipeline_mode = #tpu.pipeline_mode<synchronous>, transform_indices = @transform_2, window_bounds = array<i64: 1, 64>}, {transform_indices = @transform_3, window_bounds = array<i64: 1, 80, 64>}]} {
    %c0 = arith.constant 0 : index
    %c0_0 = arith.constant 0 : index
    %c0_1 = arith.constant 0 : index
    %0 = vector.load %arg1[%c0, %c0_0, %c0_1] : memref<1x80x32xf32, #tpu.memory_space<vmem>>, vector<1x80x32xf32>
    %1 = vector.shape_cast %0 : vector<1x80x32xf32> to vector<80x32xf32>
    %c0_2 = arith.constant 0 : index
    %c0_3 = arith.constant 0 : index
    %2 = vector.load %arg2[%c0_2, %c0_3] : memref<32x64xf32, #tpu.memory_space<vmem>>, vector<32x64xf32>
    %cst = arith.constant dense<0.000000e+00> : vector<80x64xf32>
    %3 = tpu.matmul %1, %2, %cst {dimension_numbers = #tpu.dot_dimension_numbers<[1], [0], [0], [1], [0, 0, 1, 1], [], []>} : vector<80x32xf32>, vector<32x64xf32>, vector<80x64xf32> -> vector<80x64xf32>
    %c0_4 = arith.constant 0 : index
    %c0_5 = arith.constant 0 : index
    %4 = vector.load %arg3[%c0_4, %c0_5] : memref<1x64xf32, #tpu.memory_space<vmem>>, vector<1x64xf32>
    %5 = vector.broadcast %4 : vector<1x64xf32> to vector<80x64xf32>
    %6 = arith.addf %3, %5 : vector<80x64xf32>
    %c0_6 = arith.constant 0 : index
    %c0_7 = arith.constant 0 : index
    %c0_8 = arith.constant 0 : index
    %7 = vector.load %arg4[%c0_6, %c0_7, %c0_8] : memref<1x80x64xf32, #tpu.memory_space<vmem>>, vector<1x80x64xf32>
    %8 = vector.shape_cast %7 : vector<1x80x64xf32> to vector<80x64xf32>
    %9 = vector.shape_cast %6 : vector<80x64xf32> to vector<1x80x64xf32>
    tpu.vector_store %arg4[%c0_6, %c0_7, %c0_8], %9 {strides = array<i32>} : memref<1x80x64xf32, #tpu.memory_space<vmem>>, vector<1x80x64xf32>,
    return
  }
  func.func @transform_0(%arg0: i32) -> (i32, i32, i32) {
    %c0_i32 = arith.constant 0 : i32
    %c0_i32_0 = arith.constant 0 : i32
    %c0_i32_1 = arith.constant 0 : i32
    return %arg0, %c0_i32, %c0_i32_0 : i32, i32, i32
  }
  func.func @transform_1(%arg0: i32) -> (i32, i32) {
    %c0_i32 = arith.constant 0 : i32
    %c0_i32_0 = arith.constant 0 : i32
    %c0_i32_1 = arith.constant 0 : i32
    return %c0_i32, %c0_i32_0 : i32, i32
  }
  func.func @transform_2(%arg0: i32) -> (i32, i32) {
    %c0_i32 = arith.constant 0 : i32
    %c0_i32_0 = arith.constant 0 : i32
    %c0_i32_1 = arith.constant 0 : i32
    return %c0_i32, %c0_i32_0 : i32, i32
  }
  func.func @transform_3(%arg0: i32) -> (i32, i32, i32) {
    %c0_i32 = arith.constant 0 : i32
    %c0_i32_0 = arith.constant 0 : i32
    %c0_i32_1 = arith.constant 0 : i32
    return %arg0, %c0_i32, %c0_i32_0 : i32, i32, i32
  }
}

module attributes {stable_mosaic.version = 11 : i64} {
  func.func @_tail_kernel(%arg0: i32, %arg1: memref<1x8x32xf32, #tpu.memory_space<vmem>>, %arg2: memref<1x8x32xf32, #tpu.memory_space<vmem>>, %arg3: memref<32x32xf32, #tpu.memory_space<vmem>>, %arg4: memref<1x32xf32, #tpu.memory_space<vmem>>, %arg5: memref<1x32xf32, #tpu.memory_space<vmem>>, %arg6: memref<1x32xf32, #tpu.memory_space<vmem>>, %arg7: memref<32x64xf32, #tpu.memory_space<vmem>>, %arg8: memref<1x64xf32, #tpu.memory_space<vmem>>, %arg9: memref<64x32xf32, #tpu.memory_space<vmem>>, %arg10: memref<1x32xf32, #tpu.memory_space<vmem>>, %arg11: memref<1x32xf32, #tpu.memory_space<vmem>>, %arg12: memref<1x32xf32, #tpu.memory_space<vmem>>, %arg13: memref<1x8x32xf32, #tpu.memory_space<vmem>>) attributes {dimension_semantics = [#tpu.dimension_semantics<parallel>], iteration_bounds = array<i64: 2>, scalar_prefetch = 0 : i64, scratch_operands = 0 : i64, tpu.core_type = #tpu.core_type<tc>, window_params = [{transform_indices = @transform_0, window_bounds = array<i64: 1, 8, 32>}, {transform_indices = @transform_1, window_bounds = array<i64: 1, 8, 32>}, {pipeline_mode = #tpu.pipeline_mode<synchronous>, transform_indices = @transform_2, window_bounds = array<i64: 32, 32>}, {pipeline_mode = #tpu.pipeline_mode<synchronous>, transform_indices = @transform_3, window_bounds = array<i64: 1, 32>}, {pipeline_mode = #tpu.pipeline_mode<synchronous>, transform_indices = @transform_4, window_bounds = array<i64: 1, 32>}, {pipeline_mode = #tpu.pipeline_mode<synchronous>, transform_indices = @transform_5, window_bounds = array<i64: 1, 32>}, {pipeline_mode = #tpu.pipeline_mode<synchronous>, transform_indices = @transform_6, window_bounds = array<i64: 32, 64>}, {pipeline_mode = #tpu.pipeline_mode<synchronous>, transform_indices = @transform_7, window_bounds = array<i64: 1, 64>}, {pipeline_mode = #tpu.pipeline_mode<synchronous>, transform_indices = @transform_8, window_bounds = array<i64: 64, 32>}, {pipeline_mode = #tpu.pipeline_mode<synchronous>, transform_indices = @transform_9, window_bounds = array<i64: 1, 32>}, {pipeline_mode = #tpu.pipeline_mode<synchronous>, transform_indices = @transform_10, window_bounds = array<i64: 1, 32>}, {pipeline_mode = #tpu.pipeline_mode<synchronous>, transform_indices = @transform_11, window_bounds = array<i64: 1, 32>}, {transform_indices = @transform_12, window_bounds = array<i64: 1, 8, 32>}]} {
    %c0 = arith.constant 0 : index
    %c0_0 = arith.constant 0 : index
    %c0_1 = arith.constant 0 : index
    %0 = vector.load %arg1[%c0, %c0_0, %c0_1] : memref<1x8x32xf32, #tpu.memory_space<vmem>>, vector<1x8x32xf32>
    %1 = vector.shape_cast %0 : vector<1x8x32xf32> to vector<8x32xf32>
    %c0_2 = arith.constant 0 : index
    %c0_3 = arith.constant 0 : index
    %2 = vector.load %arg3[%c0_2, %c0_3] : memref<32x32xf32, #tpu.memory_space<vmem>>, vector<32x32xf32>
    %cst = arith.constant dense<0.000000e+00> : vector<8x32xf32>
    %3 = tpu.matmul %1, %2, %cst {dimension_numbers = #tpu.dot_dimension_numbers<[1], [0], [0], [1], [0, 0, 1, 1], [], []>} : vector<8x32xf32>, vector<32x32xf32>, vector<8x32xf32> -> vector<8x32xf32>
    %c0_4 = arith.constant 0 : index
    %c0_5 = arith.constant 0 : index
    %4 = vector.load %arg4[%c0_4, %c0_5] : memref<1x32xf32, #tpu.memory_space<vmem>>, vector<1x32xf32>
    %5 = vector.broadcast %4 : vector<1x32xf32> to vector<8x32xf32>
    %6 = arith.addf %3, %5 : vector<8x32xf32>
    %c0_6 = arith.constant 0 : index
    %c0_7 = arith.constant 0 : index
    %c0_8 = arith.constant 0 : index
    %7 = vector.load %arg2[%c0_6, %c0_7, %c0_8] : memref<1x8x32xf32, #tpu.memory_space<vmem>>, vector<1x8x32xf32>
    %8 = vector.shape_cast %7 : vector<1x8x32xf32> to vector<8x32xf32>
    %9 = arith.addf %8, %6 : vector<8x32xf32>
    %cst_9 = arith.constant dense<0.000000e+00> : vector<8xf32>
    %10 = vector.multi_reduction <add>, %9, %cst_9 [1] : vector<8x32xf32> to vector<8xf32>
    %11 = vector.shape_cast %10 : vector<8xf32> to vector<8x1xf32>
    %cst_10 = arith.constant 3.200000e+01 : f32
    %12 = vector.broadcast %cst_10 : f32 to vector<8x1xf32>
    %13 = arith.divf %11, %12 : vector<8x1xf32>
    %14 = vector.broadcast %13 : vector<8x1xf32> to vector<8x32xf32>
    %15 = arith.subf %9, %14 : vector<8x32xf32>
    %16 = arith.mulf %15, %15 : vector<8x32xf32>
    %cst_11 = arith.constant dense<0.000000e+00> : vector<8xf32>
    %17 = vector.multi_reduction <add>, %16, %cst_11 [1] : vector<8x32xf32> to vector<8xf32>
    %18 = vector.shape_cast %17 : vector<8xf32> to vector<8x1xf32>
    %cst_12 = arith.constant 3.200000e+01 : f32
    %19 = vector.broadcast %cst_12 : f32 to vector<8x1xf32>
    %20 = arith.divf %18, %19 : vector<8x1xf32>
    %cst_13 = arith.constant 9.99999974E-6 : f32
    %21 = vector.broadcast %cst_13 : f32 to vector<8x1xf32>
    %22 = arith.addf %20, %21 : vector<8x1xf32>
    %23 = math.rsqrt %22 : vector<8x1xf32>
    %24 = vector.broadcast %23 : vector<8x1xf32> to vector<8x32xf32>
    %25 = arith.mulf %15, %24 : vector<8x32xf32>
    %c0_14 = arith.constant 0 : index
    %c0_15 = arith.constant 0 : index
    %26 = vector.load %arg5[%c0_14, %c0_15] : memref<1x32xf32, #tpu.memory_space<vmem>>, vector<1x32xf32>
    %27 = vector.broadcast %26 : vector<1x32xf32> to vector<8x32xf32>
    %28 = arith.mulf %25, %27 : vector<8x32xf32>
    %c0_16 = arith.constant 0 : index
    %c0_17 = arith.constant 0 : index
    %29 = vector.load %arg6[%c0_16, %c0_17] : memref<1x32xf32, #tpu.memory_space<vmem>>, vector<1x32xf32>
    %30 = vector.broadcast %29 : vector<1x32xf32> to vector<8x32xf32>
    %31 = arith.addf %28, %30 : vector<8x32xf32>
    %c0_18 = arith.constant 0 : index
    %c0_19 = arith.constant 0 : index
    %32 = vector.load %arg7[%c0_18, %c0_19] : memref<32x64xf32, #tpu.memory_space<vmem>>, vector<32x64xf32>
    %cst_20 = arith.constant dense<0.000000e+00> : vector<8x64xf32>
    %33 = tpu.matmul %31, %32, %cst_20 {dimension_numbers = #tpu.dot_dimension_numbers<[1], [0], [0], [1], [0, 0, 1, 1], [], []>} : vector<8x32xf32>, vector<32x64xf32>, vector<8x64xf32> -> vector<8x64xf32>
    %c0_21 = arith.constant 0 : index
    %c0_22 = arith.constant 0 : index
    %34 = vector.load %arg8[%c0_21, %c0_22] : memref<1x64xf32, #tpu.memory_space<vmem>>, vector<1x64xf32>
    %35 = vector.broadcast %34 : vector<1x64xf32> to vector<8x64xf32>
    %36 = arith.addf %33, %35 : vector<8x64xf32>
    %cst_23 = arith.constant 0.000000e+00 : f32
    %37 = vector.broadcast %cst_23 : f32 to vector<8x64xf32>
    %38 = arith.maximumf %36, %37 : vector<8x64xf32>
    %c0_24 = arith.constant 0 : index
    %c0_25 = arith.constant 0 : index
    %39 = vector.load %arg9[%c0_24, %c0_25] : memref<64x32xf32, #tpu.memory_space<vmem>>, vector<64x32xf32>
    %cst_26 = arith.constant dense<0.000000e+00> : vector<8x32xf32>
    %40 = tpu.matmul %38, %39, %cst_26 {dimension_numbers = #tpu.dot_dimension_numbers<[1], [0], [0], [1], [0, 0, 1, 1], [], []>} : vector<8x64xf32>, vector<64x32xf32>, vector<8x32xf32> -> vector<8x32xf32>
    %c0_27 = arith.constant 0 : index
    %c0_28 = arith.constant 0 : index
    %41 = vector.load %arg10[%c0_27, %c0_28] : memref<1x32xf32, #tpu.memory_space<vmem>>, vector<1x32xf32>
    %42 = vector.broadcast %41 : vector<1x32xf32> to vector<8x32xf32>
    %43 = arith.addf %40, %42 : vector<8x32xf32>
    %44 = arith.addf %31, %43 : vector<8x32xf32>
    %cst_29 = arith.constant dense<0.000000e+00> : vector<8xf32>
    %45 = vector.multi_reduction <add>, %44, %cst_29 [1] : vector<8x32xf32> to vector<8xf32>
    %46 = vector.shape_cast %45 : vector<8xf32> to vector<8x1xf32>
    %cst_30 = arith.constant 3.200000e+01 : f32
    %47 = vector.broadcast %cst_30 : f32 to vector<8x1xf32>
    %48 = arith.divf %46, %47 : vector<8x1xf32>
    %49 = vector.broadcast %48 : vector<8x1xf32> to vector<8x32xf32>
    %50 = arith.subf %44, %49 : vector<8x32xf32>
    %51 = arith.mulf %50, %50 : vector<8x32xf32>
    %cst_31 = arith.constant dense<0.000000e+00> : vector<8xf32>
    %52 = vector.multi_reduction <add>, %51, %cst_31 [1] : vector<8x32xf32> to vector<8xf32>
    %53 = vector.shape_cast %52 : vector<8xf32> to vector<8x1xf32>
    %cst_32 = arith.constant 3.200000e+01 : f32
    %54 = vector.broadcast %cst_32 : f32 to vector<8x1xf32>
    %55 = arith.divf %53, %54 : vector<8x1xf32>
    %cst_33 = arith.constant 9.99999974E-6 : f32
    %56 = vector.broadcast %cst_33 : f32 to vector<8x1xf32>
    %57 = arith.addf %55, %56 : vector<8x1xf32>
    %58 = math.rsqrt %57 : vector<8x1xf32>
    %59 = vector.broadcast %58 : vector<8x1xf32> to vector<8x32xf32>
    %60 = arith.mulf %50, %59 : vector<8x32xf32>
    %c0_34 = arith.constant 0 : index
    %c0_35 = arith.constant 0 : index
    %61 = vector.load %arg11[%c0_34, %c0_35] : memref<1x32xf32, #tpu.memory_space<vmem>>, vector<1x32xf32>
    %62 = vector.broadcast %61 : vector<1x32xf32> to vector<8x32xf32>
    %63 = arith.mulf %60, %62 : vector<8x32xf32>
    %c0_36 = arith.constant 0 : index
    %c0_37 = arith.constant 0 : index
    %64 = vector.load %arg12[%c0_36, %c0_37] : memref<1x32xf32, #tpu.memory_space<vmem>>, vector<1x32xf32>
    %65 = vector.broadcast %64 : vector<1x32xf32> to vector<8x32xf32>
    %66 = arith.addf %63, %65 : vector<8x32xf32>
    %c0_38 = arith.constant 0 : index
    %c0_39 = arith.constant 0 : index
    %c0_40 = arith.constant 0 : index
    %67 = vector.load %arg13[%c0_38, %c0_39, %c0_40] : memref<1x8x32xf32, #tpu.memory_space<vmem>>, vector<1x8x32xf32>
    %68 = vector.shape_cast %67 : vector<1x8x32xf32> to vector<8x32xf32>
    %69 = vector.shape_cast %66 : vector<8x32xf32> to vector<1x8x32xf32>
    tpu.vector_store %arg13[%c0_38, %c0_39, %c0_40], %69 {strides = array<i32>} : memref<1x8x32xf32, #tpu.memory_space<vmem>>, vector<1x8x32xf32>,
    return
  }
  func.func @transform_0(%arg0: i32) -> (i32, i32, i32) {
    %c0_i32 = arith.constant 0 : i32
    %c0_i32_0 = arith.constant 0 : i32
    %c0_i32_1 = arith.constant 0 : i32
    return %arg0, %c0_i32, %c0_i32_0 : i32, i32, i32
  }
  func.func @transform_1(%arg0: i32) -> (i32, i32, i32) {
    %c0_i32 = arith.constant 0 : i32
    %c0_i32_0 = arith.constant 0 : i32
    %c0_i32_1 = arith.constant 0 : i32
    return %arg0, %c0_i32, %c0_i32_0 : i32, i32, i32
  }
  func.func @transform_2(%arg0: i32) -> (i32, i32) {
    %c0_i32 = arith.constant 0 : i32
    %c0_i32_0 = arith.constant 0 : i32
    %c0_i32_1 = arith.constant 0 : i32
    return %c0_i32, %c0_i32_0 : i32, i32
  }
  func.func @transform_3(%arg0: i32) -> (i32, i32) {
    %c0_i32 = arith.constant 0 : i32
    %c0_i32_0 = arith.constant 0 : i32
    %c0_i32_1 = arith.constant 0 : i32
    return %c0_i32, %c0_i32_0 : i32, i32
  }
  func.func @transform_4(%arg0: i32) -> (i32, i32) {
    %c0_i32 = arith.constant 0 : i32
    %c0_i32_0 = arith.constant 0 : i32
    %c0_i32_1 = arith.constant 0 : i32
    return %c0_i32, %c0_i32_0 : i32, i32
  }
  func.func @transform_5(%arg0: i32) -> (i32, i32) {
    %c0_i32 = arith.constant 0 : i32
    %c0_i32_0 = arith.constant 0 : i32
    %c0_i32_1 = arith.constant 0 : i32
    return %c0_i32, %c0_i32_0 : i32, i32
  }
  func.func @transform_6(%arg0: i32) -> (i32, i32) {
    %c0_i32 = arith.constant 0 : i32
    %c0_i32_0 = arith.constant 0 : i32
    %c0_i32_1 = arith.constant 0 : i32
    return %c0_i32, %c0_i32_0 : i32, i32
  }
  func.func @transform_7(%arg0: i32) -> (i32, i32) {
    %c0_i32 = arith.constant 0 : i32
    %c0_i32_0 = arith.constant 0 : i32
    %c0_i32_1 = arith.constant 0 : i32
    return %c0_i32, %c0_i32_0 : i32, i32
  }
  func.func @transform_8(%arg0: i32) -> (i32, i32) {
    %c0_i32 = arith.constant 0 : i32
    %c0_i32_0 = arith.constant 0 : i32
    %c0_i32_1 = arith.constant 0 : i32
    return %c0_i32, %c0_i32_0 : i32, i32
  }
  func.func @transform_9(%arg0: i32) -> (i32, i32) {
    %c0_i32 = arith.constant 0 : i32
    %c0_i32_0 = arith.constant 0 : i32
    %c0_i32_1 = arith.constant 0 : i32
    return %c0_i32, %c0_i32_0 : i32, i32
  }
  func.func @transform_10(%arg0: i32) -> (i32, i32) {
    %c0_i32 = arith.constant 0 : i32
    %c0_i32_0 = arith.constant 0 : i32
    %c0_i32_1 = arith.constant 0 : i32
    return %c0_i32, %c0_i32_0 : i32, i32
  }
  func.func @transform_11(%arg0: i32) -> (i32, i32) {
    %c0_i32 = arith.constant 0 : i32
    %c0_i32_0 = arith.constant 0 : i32
    %c0_i32_1 = arith.constant 0 : i32
    return %c0_i32, %c0_i32_0 : i32, i32
  }
  func.func @transform_12(%arg0: i32) -> (i32, i32, i32) {
    %c0_i32 = arith.constant 0 : i32
    %c0_i32_0 = arith.constant 0 : i32
    %c0_i32_1 = arith.constant 0 : i32
    return %arg0, %c0_i32, %c0_i32_0 : i32, i32, i32
  }
}

</mosaic_0001>

<bundles_post_ra>
// kernel: decoder_box_forward.5
= control target key start
LH: loop header
LB: loop body
LE: loop exit
PB: predicated region body
PF: predicated region fallthrough
CT: control target
= control target key end

     0   :  { %s402_s12 = smov 0   ;;  %s473_s0 = inlined_call_operand.vmem [shape: f32[2,80,32], index: 0, kind: input, shape index: {}]   ;;  %s474_s1 = inlined_call_operand.vmem [shape: f32[32,64], index: 1, kind: input, shape index: {}]   ;;  %s475_s2 = inlined_call_operand.vmem [shape: f32[1,64], index: 2, kind: input, shape index: {}]   ;;  %s476_s3 = inlined_call_operand.vmem [shape: f32[2,80,64], index: 3, kind: output, shape index: {}]  }
   0x1 LB: > { %s333_s13 = sadd.s32 4294967295, %s380_s12   ;;  %p337_p0 = scmp.ge.s32.totalorder %s380_s12, 1  ;;  %s380_s12 = sphi %s402_s12, %s13_s12  }
   0x2   : > { %p137_p1 = scmp.lt.s32.totalorder %s380_s12, 3 }
   0x4   : > { %p138_p2 = pnand %p337_p0, %p137_p1 }
   0x5   : > { %p161_p3 = scmp.lt.s32.totalorder (!%p138_p2), %s333_s13, 1 }
   0x6   : > { %141 = sbr.rel (%p138_p2) target bundleno = 170 (0xaa), region = 32 }
   0xb   : > { %v184_v0 = vld [vmem:[%s474_s1 + $0x18] sm:$0xff]  ;;  %v183_v1 = vld [vmem:[%s474_s1 + $0x10] sm:$0xff]  ;;  %v182_v2 = vld [vmem:[%s474_s1 + $0x8] sm:$0xff]  ;;  %s478_s13 = smov (!%p161_p3, %s333_s13), 1  ;;  %vm189_vm0 = vcmask 261120   ;;  %vm267_vm1 = vcmask 523264  }
   0xc   : > { %353 = vmatpush.msra.mxu2 %v184_v0  ;;  %352 = vmatpush.msra.mxu1 %v184_v0  ;;  %v181_v3 = vld [vmem:[%s474_s1] sm:$0xff]  ;;  %s364_s22 = smul.u32 80, %s478_s13 }
   0xd   : > { %354 = vmatpush.msra.mxu3 %v184_v0  ;;  %232 = vmatpush.msra.mxu0 %v184_v0  ;;  %v373_v14 = vld [vmem:[%s475_s2] ss:$0 sm:$0xff] }
   0xe   : > { %356 = vmatpush.msra.mxu2 %v183_v1  ;;  %355 = vmatpush.msra.mxu1 %v183_v1  ;;  %s165_s25 = scalar_lea.vmem %s473_s0, %s364_s22  ;;  %s448_s30 = scalar_lea.vmem %s476_s3, %s364_s22 }
   0xf   : > { %357 = vmatpush.msra.mxu3 %v183_v1  ;;  %233 = vmatpush.msra.mxu0 %v183_v1  ;;  %v176_v4 = vld [vmem:[%s165_s25 + $0x28] sm:$0xff]  ;;  %v173_v5 = vld [vmem:[%s165_s25 + $0x10] sm:$0xff]  ;;  %v179_v6 = vld [vmem:[%s165_s25 + $0x40] sm:$0xff] }
  0x10   : > { %359 = vmatpush.msra.mxu2 %v182_v2  ;;  %358 = vmatpush.msra.mxu1 %v182_v2  ;;  %v171_v7 = vld [vmem:[%s165_s25] sm:$0xff]  ;;  %v177_v8 = vld [vmem:[%s165_s25 + $0x30] sm:$0xff]  ;;  %v174_v9 = vld [vmem:[%s165_s25 + $0x18] sm:$0xff] }
  0x11   : > { %360 = vmatpush.msra.mxu3 %v182_v2  ;;  %234 = vmatpush.msra.mxu0 %v182_v2  ;;  %v180_v10 = vld [vmem:[%s165_s25 + $0x48] sm:$0xff]  ;;  %v178_v12 = vld [vmem:[%s165_s25 + $0x38] sm:$0xff]  ;;  %v175_v13 = vld [vmem:[%s165_s25 + $0x20] sm:$0xff] }
  0x12   : > { %362 = vmatpush.msra.mxu2 %v181_v3  ;;  %361 = vmatpush.msra.mxu1 %v181_v3  ;;  %v172_v11 = vld [vmem:[%s165_s25 + $0x8] sm:$0xff] }
  0x13   : > { %345 = vmatmul.msk.f32.vlgmr.msra.gmra.mxu2 %vm189_vm0, %v176_v4  ;;  %342 = vmatmul.msk.f32.vlgmr.msra.gmra.mxu1 %vm189_vm0, %v173_v5 }
  0x14   : > { %363 = vmatpush.msra.mxu3 %v181_v3  ;;  %235 = vmatpush.msra.mxu0 %v181_v3 }
  0x15   : > { %348 = vmatmul.msk.f32.vlgmr.msra.gmra.mxu3 %vm189_vm0, %v179_v6  ;;  %340 = vmatmul.msk.f32.vlgmr.msra.gmra.mxu0 %vm189_vm0, %v171_v7 }
  0x1b   : > { %346 = vmatmul.msk.f32.gmra.mxu2 %vm189_vm0, %v177_v8  ;;  %343 = vmatmul.msk.f32.gmra.mxu1 %vm189_vm0, %v174_v9 }
  0x1d   : > { %349 = vmatmul.msk.f32.gmra.mxu3 %vm189_vm0, %v180_v10  ;;  %341 = vmatmul.msk.f32.gmra.mxu0 %vm189_vm0, %v172_v11 }
  0x23   : > { %347 = vmatmul.msk.f32.gmra.mxu2 %vm189_vm0, %v178_v12  ;;  %344 = vmatmul.msk.f32.gmra.mxu1 %vm189_vm0, %v175_v13 }
  0x90   : > { %v243_v15 = vpop.f32.mrf.mxu1 }
  0x91   : > { %v244_v16 = vadd.f32 %v373_v14, %v243_v15 }
  0x92   : > { %v237_v17 = vpop.f32.mrf.mxu0 }
  0x93   : > { %270 = vst.msk [vmem:[%s448_s30 + $0x10] sm:$0xff] %vm267_vm1, %v244_v16  ;;  %v238_v18 = vadd.f32 %v373_v14, %v237_v17 }
  0x95   : > { %268 = vst.msk [vmem:[%s448_s30] sm:$0xff] %vm267_vm1, %v238_v18 }
  0x96   : > { %v252_v19 = vpop.f32.mrf.mxu2 }
  0x97   : > { %v253_v20 = vadd.f32 %v373_v14, %v252_v19 }
  0x98   : > { %v246_v21 = vpop.f32.mrf.mxu1  ;;  %v261_v22 = vpop.f32.mrf.mxu3 }
  0x99   : > { %273 = vst.msk [vmem:[%s448_s30 + $0x28] sm:$0xff] %vm267_vm1, %v253_v20  ;;  %v247_v23 = vadd.f32 %v373_v14, %v246_v21  ;;  %v262_v24 = vadd.f32 %v373_v14, %v261_v22 }
  0x9a   : > { %v240_v25 = vpop.f32.mrf.mxu0 }
  0x9b   : > { %271 = vst.msk [vmem:[%s448_s30 + $0x18] sm:$0xff] %vm267_vm1, %v247_v23  ;;  %v241_v26 = vadd.f32 %v373_v14, %v240_v25 }
  0x9c   : > { %276 = vst.msk [vmem:[%s448_s30 + $0x40] sm:$0xff] %vm267_vm1, %v262_v24 }
  0x9d   : > { %269 = vst.msk [vmem:[%s448_s30 + $0x8] sm:$0xff] %vm267_vm1, %v241_v26 }
  0x9e   : > { %v255_v27 = vpop.f32.mrf.mxu2 }
  0x9f   : > { %v256_v28 = vadd.f32 %v373_v14, %v255_v27 }
  0xa0   : > { %v249_v29 = vpop.f32.mrf.mxu1  ;;  %v264_v30 = vpop.f32.mrf.mxu3 }
  0xa1   : > { %274 = vst.msk [vmem:[%s448_s30 + $0x30] sm:$0xff] %vm267_vm1, %v256_v28  ;;  %v250_v31 = vadd.f32 %v373_v14, %v249_v29  ;;  %v265_v32 = vadd.f32 %v373_v14, %v264_v30 }
  0xa3   : > { %272 = vst.msk [vmem:[%s448_s30 + $0x20] sm:$0xff] %vm267_vm1, %v250_v31 }
  0xa4   : > { %277 = vst.msk [vmem:[%s448_s30 + $0x48] sm:$0xff] %vm267_vm1, %v265_v32 }
  0xa6   : > { %v258_v33 = vpop.f32.mrf.mxu2 }
  0xa7   : > { %v259_v34 = vadd.f32 %v373_v14, %v258_v33 }
  0xa9   : > { %275 = vst.msk [vmem:[%s448_s30 + $0x38] sm:$0xff] %vm267_vm1, %v259_v34 }
  0xaa PF: > { %s13_s12 = sadd.s32 1, %s380_s12  }
  0xab   : > { %p10_p4 = scmp.ge.s32.totalorder %s13_s12, 4  }
  0xad   :  { %12 = sbr.rel (!%p10_p4) target bundleno = 1 (0x1), region = 62 }

// kernel: decoder_box_forward.6
= control target key start
LH: loop header
LB: loop body
LE: loop exit
PB: predicated region body
PF: predicated region fallthrough
CT: control target
= control target key end

     0   :  { %s2265_s0 = inlined_call_operand.vmem [shape: f32[2,8,32], index: 0, kind: input, shape index: {}]   ;;  %s2266_s1 = inlined_call_operand.vmem [shape: f32[2,8,32], index: 1, kind: input, shape index: {}]   ;;  %s2267_s2 = inlined_call_operand.vmem [shape: f32[4,32,8], index: 2, kind: input, shape index: {}]   ;;  %s2268_s3 = inlined_call_operand.vmem [shape: f32[4,1,8], index: 3, kind: input, shape index: {}]   ;;  %s2269_s4 = inlined_call_operand.vmem [shape: f32[4,32,8], index: 4, kind: input, shape index: {}]   ;;  %s2270_s5 = inlined_call_operand.vmem [shape: f32[4,1,8], index: 5, kind: input, shape index: {}]   ;;  %s2271_s6 = inlined_call_operand.vmem [shape: f32[4,32,8], index: 6, kind: input, shape index: {}]   ;;  %s2272_s7 = inlined_call_operand.vmem [shape: f32[4,1,8], index: 7, kind: input, shape index: {}]   ;;  %s2273_s8 = inlined_call_operand.vmem [shape: f32[4,8,32], index: 8, kind: input, shape index: {}]   ;;  %s2274_s9 = inlined_call_operand.vmem [shape: f32[1,32], index: 9, kind: input, shape index: {}]   ;;  %s2275_s10 = inlined_call_operand.vmem [shape: f32[1,32], index: 10, kind: input, shape index: {}]   ;;  %s2276_s11 = inlined_call_operand.vmem [shape: f32[1,32], index: 11, kind: input, shape index: {}]   ;;  %s2277_s12 = inlined_call_operand.vmem [shape: f32[32,32], index: 12, kind: input, shape index: {}]   ;;  %s2278_s13 = inlined_call_operand.vmem [shape: f32[1,32], index: 13, kind: input, shape index: {}]   ;;  %s2279_s14 = inlined_call_operand.vmem [shape: f32[32,16], index: 14, kind: input, shape index: {}]   ;;  %s2280_s15 = inlined_call_operand.vmem [shape: f32[1,16], index: 15, kind: input, shape index: {}]   ;;  %s2281_s16 = inlined_call_operand.vmem [shape: f32[16,16], index: 16, kind: input, shape index: {}]   ;;  %s2282_s17 = inlined_call_operand.vmem [shape: f32[2,8,32], index: 17, kind: output, shape index: {0}]   ;;  %s2283_s18 = inlined_call_operand.vmem [shape: f32[2,8,32], index: 18, kind: output, shape index: {1}]   ;;  %s2284_s19 = inlined_call_operand.vmem [shape: f32[2,8,16], index: 19, kind: output, shape index: {2}]  }
   0x1   :  { %2288 = sst [smem:[#allocation3_spill]] %s2265_s0  ;;  %s1929_s0 = smov 0  }
   0x2   :  { %2289 = sst [smem:[#allocation4_spill]] %s2266_s1 }
   0x3   :  { %2290 = sst [smem:[#allocation5_spill]] %s2267_s2 }
   0x4   :  { %2291 = sst [smem:[#allocation6_spill]] %s2268_s3 }
   0x5 LB: > { %2292 = sst [smem:[#allocation2_spill]] %s1826_s0  ;;  %s1679_s30 = sadd.s32 4294967295, %s1826_s0   ;;  %s1826_s0 = sphi %s1929_s0, %s30_s0  }
   0x6   : > { %p1683_p0 = scmp.ge.s32.totalorder %s1826_s0, 1  ;;  %p550_p1 = scmp.lt.s32.totalorder %s1826_s0, 3 }
   0x8   : > { %p551_p2 = pnand %p1683_p0, %p550_p1 }
   0x9   : > { %s2293_s24 = sld [smem:[#allocation5_spill]] (!%p551_p2)  ;;  %p616_p3 = scmp.lt.s32.totalorder (!%p551_p2), %s1679_s30, 1 }
   0xa   : > { %554 = sbr.rel (%p551_p2) target bundleno = 2961 (0xb91), region = 88  ;;  %s2294_s3 = sld [smem:[#allocation3_spill]] (!%p551_p2) }
   0xb   : > { %s2295_s29 = sld [smem:[#allocation4_spill]] (!%p551_p2) }
   0xc   : > { %s2296_s2 = sld [smem:[#allocation6_spill]] (!%p551_p2) }
   0xf   : > { %v674_v0 = vld [vmem:[%s2269_s4 + $0x18] sm:$0xff]  ;;  %v673_v1 = vld [vmem:[%s2269_s4 + $0x10] sm:$0xff]  ;;  %v672_v4 = vld [vmem:[%s2269_s4 + $0x8] sm:$0xff]  ;;  %s2299_s30 = smov (!%p616_p3, %s1679_s30), 1  ;;  %vm647_vm0 = vcmask 261120   ;;  %vm730_vm1 = vcmask 64512  }
  0x10   : > { %v642_v2 = vld [vmem:[%s2293_s24 + $0x18] sm:$0xff]  ;;  %691 = vmatpush.msra.mxu1 %v674_v0  ;;  %v641_v3 = vld [vmem:[%s2293_s24 + $0x10] sm:$0xff]  ;;  %v640_v5 = vld [vmem:[%s2293_s24 + $0x8] sm:$0xff]  ;;  %s1958_s1 = sshll.u32 %s2299_s30, 3 }
  0x11   : > { %663 = vmatpush.msra.mxu0 %v642_v2  ;;  %v671_v6 = vld [vmem:[%s2269_s4] sm:$0xff]  ;;  %s619_s26 = scalar_lea.vmem %s2294_s3, %s1958_s1  ;;  %s623_s0 = scalar_lea.vmem %s2295_s29, %s1958_s1  ;;  %v702_v20 = vld [vmem:[%s2271_s6 + $0x18] sm:$0xff]  ;;  %v701_v21 = vld [vmem:[%s2271_s6 + $0x10] sm:$0xff] }
  0x12   : > { %692 = vmatpush.msra.mxu1 %v673_v1  ;;  %v639_v7 = vld [vmem:[%s2293_s24] sm:$0xff]  ;;  %722 = vmatpush.msra.mxu2 %v702_v20  ;;  %v700_v22 = vld [vmem:[%s2271_s6 + $0x8] sm:$0xff]  ;;  %v1704_v24 = vld [vmem:[%s2269_s4 + $0x38] sm:$0xff]  ;;  %s631_s29 = scalar_lea.vmem %s2283_s18, %s1958_s1  ;;  %s635_s25 = scalar_lea.vmem %s2284_s19, %s1958_s1 }
  0x13   : > { %664 = vmatpush.msra.mxu0 %v641_v3  ;;  %v1971_v8 = vld [vmem:[%s619_s26] sm:$0xff]  ;;  %v1703_v25 = vld [vmem:[%s2269_s4 + $0x30] sm:$0xff]  ;;  %v1698_v26 = vld [vmem:[%s2293_s24 + $0x38] sm:$0xff] }
  0x14   : > { %693 = vmatpush.msra.mxu1 %v672_v4  ;;  %v637_v9 = vld [vmem:[%s623_s0] sm:$0xff]  ;;  %723 = vmatpush.msra.mxu2 %v701_v21  ;;  %v1697_v27 = vld [vmem:[%s2293_s24 + $0x30] sm:$0xff]  ;;  %v1702_v28 = vld [vmem:[%s2269_s4 + $0x28] sm:$0xff]  ;;  %s627_s0 = scalar_lea.vmem %s2282_s17, %s1958_s1 }
  0x15   : > { %665 = vmatpush.msra.mxu0 %v640_v5  ;;  %v1974_v10 = vadd.f32 %v637_v9, %v1971_v8  ;;  %v1779_v11 = vld [vmem:[%s2270_s5] ss:$0 sm:$0xff]  ;;  %v1696_v29 = vld [vmem:[%s2293_s24 + $0x28] sm:$0xff]  ;;  %v1782_v40 = vld [vmem:[%s2270_s5 + $0x1] ss:$0 sm:$0xff] }
  0x16   : > { %694 = vmatpush.msra.mxu1 %v671_v6  ;;  %v1780_v12 = vld [vmem:[%s2296_s2] ss:$0 sm:$0xff]  ;;  %724 = vmatpush.msra.mxu2 %v700_v22  ;;  %v1710_v43 = vld [vmem:[%s2271_s6 + $0x38] sm:$0xff]  ;;  %v1709_v44 = vld [vmem:[%s2271_s6 + $0x30] sm:$0xff] }
  0x17   : > { %666 = vmatpush.msra.mxu0 %v639_v7  ;;  %1690 = vmatmul.msk.f32.vlgmr.msra.gmra.mxu1 %vm647_vm0, %v1974_v10  ;;  %v699_v23 = vld [vmem:[%s2271_s6] sm:$0xff]  ;;  %v1708_v45 = vld [vmem:[%s2271_s6 + $0x28] sm:$0xff] }
  0x18   : > { %1689 = vmatmul.msk.f32.vlgmr.msra.gmra.mxu0 %vm647_vm0, %v1974_v10  ;;  %725 = vmatpush.msra.mxu2 %v699_v23  ;;  %v1701_v30 = vld [vmem:[%s2269_s4 + $0x20] sm:$0xff] }
  0x19   : > { %1691 = vmatmul.msk.f32.vlgmr.msra.gmra.mxu2 %vm647_vm0, %v1971_v8  ;;  %858 = vmatpush.msrb.mxu1 %v1704_v24  ;;  %v1695_v31 = vld [vmem:[%s2293_s24 + $0x20] sm:$0xff] }
  0x1a   : > { %828 = vmatpush.msrb.mxu0 %v1698_v26  ;;  %v1781_v37 = vld [vmem:[%s2272_s7] ss:$0 sm:$0xff]  ;;  %888 = vmatpush.msrb.mxu2 %v1710_v43  ;;  %v1783_v59 = vld [vmem:[%s2296_s2 + $0x1] ss:$0 sm:$0xff] }
  0x1b   : > { %859 = vmatpush.msrb.mxu1 %v1703_v25  ;;  %v1707_v47 = vld [vmem:[%s2271_s6 + $0x20] sm:$0xff] }
  0x1c   : > { %829 = vmatpush.msrb.mxu0 %v1697_v27  ;;  %889 = vmatpush.msrb.mxu2 %v1709_v44  ;;  %v805_v62 = vld [vmem:[%s2273_s8] sm:$0xff] }
  0x1d   : > { %860 = vmatpush.msrb.mxu1 %v1702_v28  ;;  %v1784_v63 = vld [vmem:[%s2272_s7 + $0x1] ss:$0 sm:$0xff] }
  0x1e   : > { %830 = vmatpush.msrb.mxu0 %v1696_v29  ;;  %890 = vmatpush.msrb.mxu2 %v1708_v45  ;;  %v1725_v20 = vld [vmem:[%s2269_s4 + $0x40] sm:$0xff]  ;;  %v1734_v45 = vld [vmem:[%s2271_s6 + $0x58] sm:$0xff] }
  0x1f   : > { %861 = vmatpush.msrb.mxu1 %v1701_v30 }
  0x20   : > { %831 = vmatpush.msrb.mxu0 %v1695_v31  ;;  %1706 = vmatmul.msk.f32.vlgmr.msrb.gmra.mxu1 %vm647_vm0, %v1974_v10 }
  0x21   : > { %1700 = vmatmul.msk.f32.vlgmr.msrb.gmra.mxu0 %vm647_vm0, %v1974_v10  ;;  %891 = vmatpush.msrb.mxu2 %v1707_v47  ;;  %v1732_v47 = vld [vmem:[%s2271_s6 + $0x48] sm:$0xff] }
  0x22   : > { %1712 = vmatmul.msk.f32.vlgmr.msrb.gmra.mxu2 %vm647_vm0, %v1971_v8 }
  0x23   : > { %1013 = vmatpush.msra.mxu2 %v805_v62  ;;  %v1745_v62 = vld [vmem:[%s2293_s24 + $0x78] sm:$0xff] }
  0x94   : > { %v696_v13 = vpop.f32.mrf.mxu1 }
  0x95   : > { %v668_v14 = vpop.f32.mrf.mxu0  ;;  %v697_v15 = vadd.f32 %v1779_v11, %v696_v13  ;;  %v1722_v13 = vld [vmem:[%s2293_s24 + $0x58] sm:$0xff] }
  0x96   : > { %v669_v16 = vadd.f32 %v1780_v12, %v668_v14  ;;  %v1721_v14 = vld [vmem:[%s2293_s24 + $0x50] sm:$0xff] }
  0x97   : > { %1692 = vmatpush.xpose.msk.msra.mxu3 %vm730_vm1, %v697_v15  ;;  %v1728_v15 = vld [vmem:[%s2269_s4 + $0x58] sm:$0xff] }
  0x9a   : > { %1693 = vmatmul.msk.f32.vlgmr.msra.gmra.mxu3 %vm730_vm1, %v669_v16  ;;  %v1720_v16 = vld [vmem:[%s2293_s24 + $0x48] sm:$0xff] }
  0x9c   : > { %v727_v38 = vpop.f32.mrf.mxu2 }
  0x9d   : > { %v728_v39 = vadd.f32 %v1781_v37, %v727_v38  ;;  %v863_v41 = vpop.f32.mrf.mxu1 }
  0x9e   : > { %v864_v42 = vadd.f32 %v1782_v40, %v863_v41  ;;  %v833_v60 = vpop.f32.mrf.mxu0 }
  0x9f   : > { %800 = vmatpush.msrb.mxu3 %v728_v39  ;;  %v834_v61 = vadd.f32 %v1783_v59, %v833_v60  ;;  %v1750_v59 = vld [vmem:[%s2269_s4 + $0x70] sm:$0xff]  ;;  %v1749_v60 = vld [vmem:[%s2269_s4 + $0x68] sm:$0xff] }
  0xa1   : > { %1713 = vmatpush.xpose.msk.msra.mxu3 %vm730_vm1, %v864_v42 }
  0xa5   : > { %v893_v0 = vpop.f32.mrf.mxu2 }
  0xa6   : > { %v894_v1 = vadd.f32 %v1784_v63, %v893_v0  ;;  %v1744_v63 = vld [vmem:[%s2293_s24 + $0x70] sm:$0xff] }
  0xa7   : > { %v1740_v0 = vld [vmem:[%s2273_s8 + $0x10] sm:$0xff] }
  0xa8   : > { %965 = vmatpush.msra.mxu0 %v894_v1  ;;  %v1743_v1 = vld [vmem:[%s2293_s24 + $0x68] sm:$0xff] }
  0xaa   : > { %1070 = vmatpush.msrb.mxu0 %v1728_v15 }
 0x11d   : > { %v754_v17 = vpop.f32.mrf.mxu3 }
 0x11e   : > { %v757_v18 = vmul.f32 0.35355338, %v754_v17  ;;  %v1727_v17 = vld [vmem:[%s2269_s4 + $0x50] sm:$0xff] }
 0x11f   : > { %1071 = vmatpush.msrb.mxu0 %v1727_v17 }
 0x120   : > { %v758_v19 = vsel %vm730_vm1, %v757_v18, -inf }
 0x121   : > { %759 = vmax.xlane.f32.xlu0 %v758_v19  ;;  %v1726_v19 = vld [vmem:[%s2269_s4 + $0x48] sm:$0xff] }
 0x122   : > { %1072 = vmatpush.msrb.mxu0 %v1726_v19 }
 0x124   : > { %1073 = vmatpush.msrb.mxu0 %v1725_v20  ;;  %v1789_v20 = vld [vmem:[%s2296_s2 + $0x3] ss:$0 sm:$0xff] }
 0x194   : > { %v760_v32 = vpop.xlane.xlu0 %759 }
 0x195   : > { %v761_v33 = vsub.f32 %v757_v18, %v760_v32  ;;  %v1719_v18 = vld [vmem:[%s2293_s24 + $0x40] sm:$0xff] }
 0x197   : > { %v762_v34 = vmul.f32 1.442695, %v761_v33  ;;  %v1716_v33 = vld [vmem:[%s2273_s8 + $0x8] sm:$0xff] }
 0x198   : > { %990 = vmatpush.msra.mxu1 %v1716_v33 }
 0x199   : > { %1796 = vpow2.f32 %v762_v34 }
 0x19a   : > { %1100 = vmatpush.msrb.mxu1 %v1734_v45 }
 0x19f   : > { %v1797_v35 = vpop.eup %1796 }
 0x1a0   : > { %v764_v36 = vsel %vm730_vm1, %v1797_v35, 0.0 }
 0x1a1   : > { %765 = vadd.xlane.f32.xlu0 %v764_v36  ;;  %v1786_v36 = vld [vmem:[%s2296_s2 + $0x2] ss:$0 sm:$0xff] }
 0x214   : > { %v766_v46 = vpop.xlane.xlu0 %765 }
 0x215   : > { %1798 = vrcp.f32 %v766_v46  ;;  %v778_v51 = vand.u32 2147483648, %v766_v46  ;;  %v776_v53 = vand.u32 2147483647, %v766_v46  ;;  %vm772_vm3 = vweird.f32 %v766_v46 }
 0x217   : > { %v779_v55 = vor.u32 1.1754944e-38, %v778_v51  ;;  %vm777_vm5 = vcmp.eq.f32.partialorder %v776_v53, 8.507059e+37 }
 0x21b   : > { %v1799_v48 = vpop.eup %1798 }
 0x21c   : > { %v768_v49 = vmul.f32 %v1799_v48, %v766_v46  ;;  %vm773_vm2 = vweird.f32 %v1799_v48  ;;  %v1733_v46 = vld [vmem:[%s2271_s6 + $0x50] sm:$0xff] }
 0x21d   : > { %vm774_vm4 = vmor %vm772_vm3, %vm773_vm2  ;;  %1101 = vmatpush.msrb.mxu1 %v1733_v46 }
 0x21e   : > { %v769_v50 = vsub.f32 1.0, %v768_v49 }
 0x21f   : > { %1102 = vmatpush.msrb.mxu1 %v1732_v47 }
 0x220   : > { %v770_v52 = vmul.f32 %v1799_v48, %v769_v50 }
 0x222   : > { %v771_v54 = vadd.f32 %v1799_v48, %v770_v52 }
 0x224   : > { %v775_v56 = vsel %vm774_vm4, %v1799_v48, %v771_v54  ;;  %v1731_v48 = vld [vmem:[%s2271_s6 + $0x40] sm:$0xff] }
 0x225   : > { %v780_v57 = vsel %vm777_vm5, %v779_v55, %v775_v56  ;;  %1103 = vmatpush.msrb.mxu1 %v1731_v48  ;;  %v1787_v55 = vld [vmem:[%s2272_s7 + $0x2] ss:$0 sm:$0xff]  ;;  %v1751_v56 = vld [vmem:[%s2269_s4 + $0x78] sm:$0xff] }
 0x226   : > { %v781_v58 = vmul.f32 %v1797_v35, %v780_v57  ;;  %v1785_v35 = vld [vmem:[%s2270_s5 + $0x2] ss:$0 sm:$0xff] }
 0x228   : > { %1694 = vmatmul.msk.f32.vlgmr.msrb.gmra.mxu3 %vm730_vm1, %v781_v58 }
 0x229   : > { %1040 = vmatpush.msrb.mxu3 %v1722_v13 }
 0x22b   : > { %1041 = vmatpush.msrb.mxu3 %v1721_v14 }
 0x22d   : > { %1042 = vmatpush.msrb.mxu3 %v1720_v16 }
 0x22f   : > { %1043 = vmatpush.msrb.mxu3 %v1719_v18 }
 0x230   : > { %1714 = vmatmul.msk.f32.vlgmr.msra.gmra.mxu3 %vm730_vm1, %v834_v61  ;;  %v1748_v61 = vld [vmem:[%s2269_s4 + $0x60] sm:$0xff] }
 0x238   : > { %1724 = vmatmul.msk.f32.vlgmr.msrb.gmra.mxu3 %vm647_vm0, %v1974_v10 }
 0x2ab   : > { %v802_v2 = vpop.f32.mrf.mxu3 }
 0x2ac   : > { %1718 = vmatmul.msk.f32.vlgmr.msra.gmra.mxu2 %vm730_vm1, %v802_v2  ;;  %v1742_v2 = vld [vmem:[%s2293_s24 + $0x60] sm:$0xff] }
 0x2b3   : > { %v919_v3 = vpop.f32.mrf.mxu3 }
 0x2b4   : > { %v922_v4 = vmul.f32 0.35355338, %v919_v3 }
 0x2b6   : > { %v923_v5 = vsel %vm730_vm1, %v922_v4, -inf }
 0x2b7   : > { %924 = vmax.xlane.f32.xlu1 %v923_v5 }
 0x2bb   : > { %v1045_v37 = vpop.f32.mrf.mxu3 }
 0x2bc   : > { %v1046_v40 = vadd.f32 %v1786_v36, %v1045_v37 }
 0x32a   : > { %v925_v6 = vpop.xlane.xlu1 %924 }
 0x32b   : > { %v926_v7 = vsub.f32 %v922_v4, %v925_v6 }
 0x32d   : > { %v927_v9 = vmul.f32 1.442695, %v926_v7 }
 0x32f   : > { %1800 = vpow2.f32 %v927_v9  ;;  %v2108_v41 = vpop.f32.mrf.mxu2 }
 0x335   : > { %v1801_v11 = vpop.eup %1800 }
 0x336   : > { %v929_v12 = vsel %vm730_vm1, %v1801_v11, 0.0 }
 0x337   : > { %930 = vadd.xlane.f32.xlu1 %v929_v12 }
 0x3aa   : > { %v931_v21 = vpop.xlane.xlu1 %930 }
 0x3ab   : > { %1802 = vrcp.f32 %v931_v21  ;;  %v943_v25 = vand.u32 2147483648, %v931_v21  ;;  %v941_v27 = vand.u32 2147483647, %v931_v21  ;;  %vm937_vm7 = vweird.f32 %v931_v21 }
 0x3ad   : > { %v944_v29 = vor.u32 1.1754944e-38, %v943_v25  ;;  %vm942_vm9 = vcmp.eq.f32.partialorder %v941_v27, 8.507059e+37 }
 0x3b1   : > { %v1803_v22 = vpop.eup %1802 }
 0x3b2   : > { %v933_v23 = vmul.f32 %v1803_v22, %v931_v21  ;;  %vm938_vm6 = vweird.f32 %v1803_v22 }
 0x3b3   : > { %vm939_vm8 = vmor %vm937_vm7, %vm938_vm6  ;;  %vm1504_vm7 = vcmask 130048  }
 0x3b4   : > { %v934_v24 = vsub.f32 1.0, %v933_v23 }
 0x3b6   : > { %v935_v26 = vmul.f32 %v1803_v22, %v934_v24 }
 0x3b8   : > { %v936_v28 = vadd.f32 %v1803_v22, %v935_v26 }
 0x3ba   : > { %v940_v30 = vsel %vm939_vm8, %v1803_v22, %v936_v28 }
 0x3bb   : > { %v945_v31 = vsel %vm942_vm9, %v944_v29, %v940_v30  ;;  %v1757_v29 = vld [vmem:[%s2271_s6 + $0x78] sm:$0xff]  ;;  %v1756_v30 = vld [vmem:[%s2271_s6 + $0x70] sm:$0xff] }
 0x3bc   : > { %v946_v32 = vmul.f32 %v1801_v11, %v945_v31  ;;  %v1755_v31 = vld [vmem:[%s2271_s6 + $0x68] sm:$0xff] }
 0x3be   : > { %1715 = vmatmul.msk.f32.vlgmr.msra.gmra.mxu0 %vm730_vm1, %v946_v32  ;;  %v1754_v32 = vld [vmem:[%s2271_s6 + $0x60] sm:$0xff] }
 0x3bf   : > { %1202 = vmatpush.msra.mxu0 %v1740_v0 }
 0x3c6   : > { %1730 = vmatmul.msk.f32.vlgmr.msrb.gmra.mxu0 %vm647_vm0, %v1974_v10 }
 0x43b   : > { %v967_v34 = vpop.f32.mrf.mxu0 }
 0x43c   : > { %1717 = vmatmul.msk.f32.vlgmr.msra.gmra.mxu1 %vm730_vm1, %v967_v34 }
 0x43d   : > { %1230 = vmatpush.msra.mxu1 %v1745_v62 }
 0x43f   : > { %1231 = vmatpush.msra.mxu1 %v1744_v63 }
 0x441   : > { %1232 = vmatpush.msra.mxu1 %v1743_v1 }
 0x443   : > { %v1075_v38 = vpop.f32.mrf.mxu0  ;;  %1233 = vmatpush.msra.mxu1 %v1742_v2 }
 0x444   : > { %v1076_v39 = vadd.f32 %v1785_v35, %v1075_v38  ;;  %1736 = vmatmul.msk.f32.vlgmr.msrb.gmra.mxu1 %vm647_vm0, %v1971_v8  ;;  %v1790_v38 = vld [vmem:[%s2272_s7 + $0x3] ss:$0 sm:$0xff] }
 0x446   : > { %1737 = vmatpush.xpose.msk.msrb.mxu2 %vm730_vm1, %v1076_v39 }
 0x449   : > { %1738 = vmatmul.msk.f32.vlgmr.msrb.gmra.mxu2 %vm730_vm1, %v1046_v40 }
 0x44a   : > { %1260 = vmatpush.msra.mxu2 %v1751_v56 }
 0x44c   : > { %1261 = vmatpush.msra.mxu2 %v1750_v59  ;;  %1747 = vmatmul.msk.f32.vlgmr.msra.gmra.mxu1 %vm647_vm0, %v1974_v10 }
 0x44e   : > { %1262 = vmatpush.msra.mxu2 %v1749_v60 }
 0x450   : > { %1263 = vmatpush.msra.mxu2 %v1748_v61  ;;  %v1828_v61 = vmov 32.0  }
 0x451   : > { %1753 = vmatmul.msk.f32.vlgmr.msra.gmra.mxu2 %vm647_vm0, %v1974_v10  ;;  %v1788_v10 = vld [vmem:[%s2270_s5 + $0x3] ss:$0 sm:$0xff] }
 0x4b9   : > { %v992_v54 = vpop.f32.mrf.mxu1 }
 0x4ba   : > { %v1016_v23 = vadd.f32 %v2108_v41, %v992_v54  ;;  %v1763_v41 = vld [vmem:[%s2273_s8 + $0x18] sm:$0xff] }
 0x4bb   : > { %1392 = vmatpush.msrb.mxu2 %v1763_v41 }
 0x4c1   : > { %v1105_v57 = vpop.f32.mrf.mxu1 }
 0x4c2   : > { %v1106_v58 = vadd.f32 %v1787_v55, %v1105_v57  ;;  %v1791_v57 = vld [vmem:[%s2274_s9] ss:$0 sm:$0xff] }
 0x4c4   : > { %1177 = vmatpush.msra.mxu3 %v1106_v58 }
 0x4c6   : > { %1290 = vmatpush.msrb.mxu3 %v1757_v29  ;;  %v1793_v29 = vld [vmem:[%s2276_s11] ss:$0 sm:$0xff] }
 0x4c8   : > { %1291 = vmatpush.msrb.mxu3 %v1756_v30 }
 0x4c9   : > { %v1235_v21 = vpop.f32.mrf.mxu1 }
 0x4ca   : > { %v1236_v22 = vadd.f32 %v1789_v20, %v1235_v21  ;;  %1292 = vmatpush.msrb.mxu3 %v1755_v31 }
 0x4cc   : > { %v1131_v42 = vpop.f32.mrf.mxu2  ;;  %1293 = vmatpush.msrb.mxu3 %v1754_v32  ;;  %v1794_v32 = vld [vmem:[%s2280_s15] ss:$0 sm:$0xff] }
 0x4cd   : > { %v1134_v43 = vmul.f32 0.35355338, %v1131_v42 }
 0x4cf   : > { %v1135_v44 = vsel %vm730_vm1, %v1134_v43, -inf }
 0x4d0   : > { %1136 = vmax.xlane.f32.xlu2 %v1135_v44 }
 0x4d4   : > { %v1265_v17 = vpop.f32.mrf.mxu2 }
 0x4d5   : > { %v1266_v18 = vadd.f32 %v1788_v10, %v1265_v17  ;;  %v1476_v10 = vld [vmem:[%s2279_s14] sm:$0xff] }
 0x4d7   : > { %1760 = vmatpush.xpose.msk.msrb.mxu0 %vm730_vm1, %v1266_v18 }
 0x543   : > { %v1137_v49 = vpop.xlane.xlu2 %1136 }
 0x544   : > { %v1138_v50 = vsub.f32 %v1134_v43, %v1137_v49 }
 0x546   : > { %v1139_v51 = vmul.f32 1.442695, %v1138_v50 }
 0x548   : > { %1804 = vpow2.f32 %v1139_v51 }
 0x54e   : > { %v1805_v52 = vpop.eup %1804 }
 0x54f   : > { %v1141_v53 = vsel %vm730_vm1, %v1805_v52, 0.0 }
 0x550   : > { %1142 = vadd.xlane.f32.xlu2 %v1141_v53 }
 0x5c3   : > { %v1143_v3 = vpop.xlane.xlu2 %1142 }
 0x5c4   : > { %1806 = vrcp.f32 %v1143_v3  ;;  %v1155_v7 = vand.u32 2147483648, %v1143_v3  ;;  %v1153_v11 = vand.u32 2147483647, %v1143_v3  ;;  %vm1149_vm11 = vweird.f32 %v1143_v3 }
 0x5c6   : > { %v1156_v13 = vor.u32 1.1754944e-38, %v1155_v7  ;;  %vm1154_vm13 = vcmp.eq.f32.partialorder %v1153_v11, 8.507059e+37  ;;  %v1479_v11 = vld [vmem:[%s2279_s14 + $0x18] sm:$0xff] }
 0x5ca   : > { %v1807_v4 = vpop.eup %1806 }
 0x5cb   : > { %v1145_v5 = vmul.f32 %v1807_v4, %v1143_v3  ;;  %vm1150_vm10 = vweird.f32 %v1807_v4 }
 0x5cc   : > { %vm1151_vm12 = vmor %vm1149_vm11, %vm1150_vm10 }
 0x5cd   : > { %v1146_v6 = vsub.f32 1.0, %v1145_v5 }
 0x5cf   : > { %v1147_v9 = vmul.f32 %v1807_v4, %v1146_v6 }
 0x5d1   : > { %v1148_v12 = vadd.f32 %v1807_v4, %v1147_v9 }
 0x5d3   : > { %v1152_v14 = vsel %vm1151_vm12, %v1807_v4, %v1148_v12  ;;  %v1446_v12 = vld [vmem:[%s2277_s12 + $0x10] sm:$0xff] }
 0x5d4   : > { %v1157_v15 = vsel %vm1154_vm13, %v1156_v13, %v1152_v14  ;;  %v1478_v13 = vld [vmem:[%s2279_s14 + $0x10] sm:$0xff]  ;;  %v1445_v14 = vld [vmem:[%s2277_s12 + $0x8] sm:$0xff] }
 0x5d5   : > { %v1158_v16 = vmul.f32 %v1805_v52, %v1157_v15  ;;  %v1477_v15 = vld [vmem:[%s2279_s14 + $0x8] sm:$0xff] }
 0x5d7   : > { %1739 = vmatmul.msk.f32.vlgmr.msra.gmra.mxu3 %vm730_vm1, %v1158_v16  ;;  %v1444_v16 = vld [vmem:[%s2277_s12] sm:$0xff] }
 0x5df   : > { %1759 = vmatmul.msk.f32.vlgmr.msrb.gmra.mxu3 %vm647_vm0, %v1971_v8 }
 0x65a   : > { %v1179_v19 = vpop.f32.mrf.mxu3 }
 0x65b   : > { %1741 = vmatmul.msk.f32.vlgmr.msra.gmra.mxu0 %vm730_vm1, %v1179_v19 }
 0x65c   : > { %1496 = vmatpush.msra.mxu0 %v1479_v11 }
 0x65e   : > { %1497 = vmatpush.msra.mxu0 %v1478_v13 }
 0x660   : > { %1498 = vmatpush.msra.mxu0 %v1477_v15 }
 0x662   : > { %v1295_v39 = vpop.f32.mrf.mxu3  ;;  %1499 = vmatpush.msra.mxu0 %v1476_v10 }
 0x663   : > { %1761 = vmatmul.msk.f32.vlgmr.msrb.gmra.mxu0 %vm730_vm1, %v1236_v22  ;;  %v1296_v40 = vadd.f32 %v1790_v38, %v1295_v39  ;;  %v1512_v39 = vld [vmem:[%s2281_s16 + $0x8] sm:$0xff] }
 0x665   : > { %1367 = vmatpush.msrb.mxu1 %v1296_v40  ;;  %v1511_v40 = vld [vmem:[%s2281_s16] sm:$0xff] }
 0x667   : > { %1530 = vmatpush.msra.mxu1 %v1512_v39 }
 0x669   : > { %1531 = vmatpush.msra.mxu1 %v1511_v40 }
 0x6d8   : > { %v1204_v24 = vpop.f32.mrf.mxu0 }
 0x6d9   : > { %v1207_v25 = vadd.f32 %v1204_v24, %v1016_v23 }
 0x6e0   : > { %v1321_v26 = vpop.f32.mrf.mxu0 }
 0x6e1   : > { %v1324_v27 = vmul.f32 0.35355338, %v1321_v26  ;;  %v1792_v26 = vld [vmem:[%s2275_s10] ss:$0 sm:$0xff] }
 0x6e3   : > { %v1325_v28 = vsel %vm730_vm1, %v1324_v27, -inf }
 0x6e4   : > { %1326 = vmax.xlane.f32.xlu0 %v1325_v28 }
 0x757   : > { %v1327_v33 = vpop.xlane.xlu0 %1326 }
 0x758   : > { %v1328_v34 = vsub.f32 %v1324_v27, %v1327_v33 }
 0x75a   : > { %v1329_v35 = vmul.f32 1.442695, %v1328_v34 }
 0x75c   : > { %1808 = vpow2.f32 %v1329_v35 }
 0x762   : > { %v1809_v36 = vpop.eup %1808 }
 0x763   : > { %v1331_v37 = vsel %vm730_vm1, %v1809_v36, 0.0 }
 0x764   : > { %1332 = vadd.xlane.f32.xlu1 %v1331_v37 }
 0x7d7   : > { %v1333_v42 = vpop.xlane.xlu1 %1332 }
 0x7d8   : > { %1810 = vrcp.f32 %v1333_v42  ;;  %v1345_v46 = vand.u32 2147483648, %v1333_v42  ;;  %v1343_v48 = vand.u32 2147483647, %v1333_v42  ;;  %vm1339_vm15 = vweird.f32 %v1333_v42 }
 0x7d9   : > { %1812 = vrcp.f32 %v1828_v61 }
 0x7da   : > { %v1346_v50 = vor.u32 1.1754944e-38, %v1345_v46  ;;  %vm1344_vm3 = vcmp.eq.f32.partialorder %v1343_v48, 8.507059e+37 }
 0x7de   : > { %v1811_v43 = vpop.eup %1810 }
 0x7df   : > { %v1335_v44 = vmul.f32 %v1811_v43, %v1333_v42  ;;  %vm1340_vm14 = vweird.f32 %v1811_v43  ;;  %v1813_v62 = vpop.eup %1812 }
 0x7e0   : > { %vm1341_vm2 = vmor %vm1339_vm15, %vm1340_vm14  ;;  %v1408_v63 = vmul.f32 32.0, %v1813_v62 }
 0x7e1   : > { %v1336_v45 = vsub.f32 1.0, %v1335_v44 }
 0x7e2   : > { %v1409_v0 = vsub.f32 1.0, %v1408_v63 }
 0x7e3   : > { %v1337_v47 = vmul.f32 %v1811_v43, %v1336_v45 }
 0x7e4   : > { %v1410_v1 = vmul.f32 %v1813_v62, %v1409_v0 }
 0x7e5   : > { %v1338_v49 = vadd.f32 %v1811_v43, %v1337_v47 }
 0x7e6   : > { %v1411_v2 = vadd.f32 %v1813_v62, %v1410_v1 }
 0x7e7   : > { %v1342_v51 = vsel %vm1341_vm2, %v1811_v43, %v1338_v49 }
 0x7e8   : > { %v1347_v52 = vsel %vm1344_vm3, %v1346_v50, %v1342_v51 }
 0x7e9   : > { %v1348_v53 = vmul.f32 %v1809_v36, %v1347_v52  ;;  %v1795_v36 = vld [vmem:[%s2278_s13] ss:$0 sm:$0xff] }
 0x7eb   : > { %1762 = vmatmul.msk.f32.vlgmr.msrb.gmra.mxu1 %vm730_vm1, %v1348_v53 }
 0x868   : > { %v1369_v54 = vpop.f32.mrf.mxu1 }
 0x869   : > { %1764 = vmatmul.msk.f32.vlgmr.msrb.gmra.mxu2 %vm730_vm1, %v1369_v54  ;;  %vm1412_vm1 = vweird.f32 %v1813_v62 }
 0x86a   : > { %v1413_v3 = vsel %vm1412_vm1, %v1813_v62, %v1411_v2 }
 0x8ec   : > { %v1394_v55 = vpop.f32.mrf.mxu2 }
 0x8ed   : > { %v1397_v56 = vadd.f32 %v1394_v55, %v1207_v25 }
 0x8ef   : > { %v1398_v58 = vadd.f32 %v1397_v56, %v1971_v8  ;;  %v1447_v8 = vld [vmem:[%s2277_s12 + $0x18] sm:$0xff] }
 0x8f0   : > { %1467 = vmatpush.msra.mxu3 %v1447_v8 }
 0x8f1   : > { %v1403_v59 = vadd.f32 %v1791_v57, %v1398_v58 }
 0x8f2   : > { %1468 = vmatpush.msra.mxu3 %v1446_v12 }
 0x8f3   : > { %v1404_v60 = vsel %vm647_vm0, %v1403_v59, 0.0 }
 0x8f4   : > { %1405 = vadd.xlane.f32.xlu2 %v1404_v60  ;;  %1469 = vmatpush.msra.mxu3 %v1445_v14 }
 0x8f6   : > { %1470 = vmatpush.msra.mxu3 %v1444_v16 }
 0x967   : > { %v1406_v4 = vpop.xlane.xlu2 %1405 }
 0x968   : > { %v1414_v5 = vmul.f32 %v1413_v3, %v1406_v4 }
 0x96a   : > { %v1415_v6 = vsub.f32 %v1403_v59, %v1414_v5 }
 0x96c   : > { %v1416_v7 = vmul.f32 %v1415_v6, %v1415_v6 }
 0x96e   : > { %v1417_v9 = vsel %vm647_vm0, %v1416_v7, 0.0 }
 0x96f   : > { %1418 = vadd.xlane.f32.xlu0 %v1417_v9 }
 0x9e2   : > { %v1419_v17 = vpop.xlane.xlu0 %1418 }
 0x9e3   : > { %v1420_v18 = vmul.f32 %v1419_v17, %v1413_v3 }
 0x9e5   : > { %v1421_v19 = vadd.f32 1e-05, %v1420_v18 }
 0x9e7   : > { %1814 = vrsqrt.f32 %v1421_v19  ;;  %vm1428_vm5 = vweird.f32 %v1421_v19 }
 0x9ed   : > { %v1815_v20 = vpop.eup %1814 }
 0x9ee   : > { %v1423_v21 = vmul.f32 %v1815_v20, %v1421_v19  ;;  %vm1429_vm4 = vweird.f32 %v1815_v20 }
 0x9ef   : > { %vm1430_vm6 = vmor %vm1428_vm5, %vm1429_vm4 }
 0x9f0   : > { %v1424_v22 = vmul.f32 %v1815_v20, %v1423_v21 }
 0x9f2   : > { %v1425_v23 = vmul.f32 0.5, %v1424_v22 }
 0x9f4   : > { %v1426_v24 = vsub.f32 1.5, %v1425_v23 }
 0x9f6   : > { %v1427_v25 = vmul.f32 %v1815_v20, %v1426_v24 }
 0x9f8   : > { %v1431_v27 = vsel %vm1430_vm6, %v1815_v20, %v1427_v25 }
 0x9f9   : > { %v1432_v28 = vmul.f32 %v1431_v27, %v1415_v6 }
 0x9fb   : > { %v1437_v30 = vmul.f32 %v1792_v26, %v1432_v28 }
 0x9fd   : > { %v1442_v31 = vadd.f32 %v1793_v29, %v1437_v30 }
 0x9ff   : > { %1443 = vst.msk [vmem:[%s627_s0] sm:$0xff] %vm647_vm0, %v1442_v31  ;;  %1765 = vmatmul.msk.f32.vlgmr.msra.gmra.mxu3 %vm647_vm0, %v1442_v31  ;;  %1766 = vmatmul.msk.f32.vlgmr.msra.gmra.mxu0 %vm647_vm0, %v1442_v31 }
 0xa7c   : > { %v1501_v33 = vpop.f32.mrf.mxu0 }
 0xa7d   : > { %v1502_v34 = vadd.f32 %v1794_v32, %v1501_v33 }
 0xa7f   : > { %v1505_v35 = vsel %vm1504_vm7, %v1502_v34, -inf }
 0xa80   : > { %1506 = vmax.xlane.f32.xlu1 %v1505_v35 }
 0xa82   : > { %v1472_v37 = vpop.f32.mrf.mxu3 }
 0xa83   : > { %v1473_v38 = vadd.f32 %v1795_v36, %v1472_v37 }
 0xa85   : > { %1475 = vst.msk [vmem:[%s631_s29] sm:$0xff] %vm647_vm0, %v1473_v38 }
 0xaf3   : > { %v1507_v41 = vpop.xlane.xlu1 %1506 }
 0xaf4   : > { %v1508_v42 = vsub.f32 %v1502_v34, %v1507_v41 }
 0xaf6   : > { %v1509_v43 = vmul.f32 1.442695, %v1508_v42 }
 0xaf8   : > { %1816 = vpow2.f32 %v1509_v43 }
 0xafe   : > { %v1817_v44 = vpop.eup %1816 }
 0xaff   : > { %1767 = vmatmul.msk.f32.vlgmr.msra.gmra.mxu1 %vm1504_vm7, %v1817_v44 }
 0xb7c   : > { %v1533_v45 = vpop.f32.mrf.mxu1 }
 0xb7d   : > { %1818 = vrcp.f32 %v1533_v45  ;;  %v1547_v49 = vand.u32 2147483648, %v1533_v45  ;;  %v1545_v51 = vand.u32 2147483647, %v1533_v45  ;;  %vm1541_vm8 = vweird.f32 %v1533_v45 }
 0xb7f   : > { %v1548_v53 = vor.u32 1.1754944e-38, %v1547_v49  ;;  %vm1546_vm10 = vcmp.eq.f32.partialorder %v1545_v51, 8.507059e+37 }
 0xb83   : > { %v1819_v46 = vpop.eup %1818 }
 0xb84   : > { %v1537_v47 = vmul.f32 %v1819_v46, %v1533_v45  ;;  %vm1542_vm0 = vweird.f32 %v1819_v46 }
 0xb85   : > { %vm1543_vm9 = vmor %vm1541_vm8, %vm1542_vm0 }
 0xb86   : > { %v1538_v48 = vsub.f32 1.0, %v1537_v47 }
 0xb88   : > { %v1539_v50 = vmul.f32 %v1819_v46, %v1538_v48 }
 0xb8a   : > { %v1540_v52 = vadd.f32 %v1819_v46, %v1539_v50 }
 0xb8c   : > { %v1544_v54 = vsel %vm1543_vm9, %v1819_v46, %v1540_v52 }
 0xb8d   : > { %v1549_v55 = vsel %vm1546_vm10, %v1548_v53, %v1544_v54 }
 0xb8e   : > { %v1550_v56 = vmul.f32 %v1817_v44, %v1549_v55 }
 0xb90   : > { %1551 = vst.msk [vmem:[%s635_s25] sm:$0xff] %vm1504_vm7, %v1550_v56 }
 0xb91 PF: > { %s2297_s3 = sld [smem:[#allocation2_spill]] }
 0xb97   : > { %s30_s0 = sadd.s32 1, %s2297_s3  }
 0xb98   : > { %p27_p4 = scmp.ge.s32.totalorder %s30_s0, 4  }
 0xb9a   :  { %29 = sbr.rel (!%p27_p4) target bundleno = 5 (0x5), region = 166 }

// kernel: decoder_box_forward.7
= control target key start
LH: loop header
LB: loop body
LE: loop exit
PB: predicated region body
PF: predicated region fallthrough
CT: control target
= control target key end

     0   :  { %s776_s21 = smov 0   ;;  %s883_s0 = inlined_call_operand.vmem [shape: f32[2,8,32], index: 0, kind: input, shape index: {}]   ;;  %s884_s1 = inlined_call_operand.vmem [shape: f32[2,8,32], index: 1, kind: input, shape index: {}]   ;;  %s885_s2 = inlined_call_operand.vmem [shape: f32[32,32], index: 2, kind: input, shape index: {}]   ;;  %s886_s3 = inlined_call_operand.vmem [shape: f32[1,32], index: 3, kind: input, shape index: {}]   ;;  %s887_s4 = inlined_call_operand.vmem [shape: f32[1,32], index: 4, kind: input, shape index: {}]   ;;  %s888_s5 = inlined_call_operand.vmem [shape: f32[1,32], index: 5, kind: input, shape index: {}]   ;;  %s889_s6 = inlined_call_operand.vmem [shape: f32[32,64], index: 6, kind: input, shape index: {}]   ;;  %s890_s7 = inlined_call_operand.vmem [shape: f32[1,64], index: 7, kind: input, shape index: {}]   ;;  %s891_s8 = inlined_call_operand.vmem [shape: f32[64,32], index: 8, kind: input, shape index: {}]   ;;  %s892_s9 = inlined_call_operand.vmem [shape: f32[1,32], index: 9, kind: input, shape index: {}]   ;;  %s893_s10 = inlined_call_operand.vmem [shape: f32[1,32], index: 10, kind: input, shape index: {}]   ;;  %s894_s11 = inlined_call_operand.vmem [shape: f32[1,32], index: 11, kind: input, shape index: {}]   ;;  %s895_s12 = inlined_call_operand.vmem [shape: f32[2,8,32], index: 12, kind: output, shape index: {}]  }
   0x1 LB: > { %s667_s22 = sadd.s32 4294967295, %s708_s21   ;;  %p671_p0 = scmp.ge.s32.totalorder %s708_s21, 1  ;;  %s708_s21 = sphi %s776_s21, %s22_s21  }
   0x2   : > { %p370_p1 = scmp.lt.s32.totalorder %s708_s21, 3 }
   0x4   : > { %p371_p2 = pnand %p671_p0, %p370_p1 }
   0x5   : > { %p414_p3 = scmp.lt.s32.totalorder (!%p371_p2), %s667_s22, 1 }
   0x6   : > { %374 = sbr.rel (%p371_p2) target bundleno = 952 (0x3b8), region = 68 }
   0xb   : > { %v430_v0 = vld [vmem:[%s885_s2 + $0x18] sm:$0xff]  ;;  %v429_v1 = vld [vmem:[%s885_s2 + $0x10] sm:$0xff]  ;;  %v428_v2 = vld [vmem:[%s885_s2 + $0x8] sm:$0xff]  ;;  %s897_s22 = smov (!%p414_p3, %s667_s22), 1  ;;  %vm435_vm0 = vcmask 261120   ;;  %v710_v11 = vmov 32.0  }
   0xc   : > { %451 = vmatpush.msra.mxu0 %v430_v0  ;;  %v427_v3 = vld [vmem:[%s885_s2] sm:$0xff]  ;;  %s796_s13 = sshll.u32 %s897_s22, 3  ;;  %696 = vrcp.f32 %v710_v11  ;;  %v503_v23 = vld [vmem:[%s889_s6 + $0x18] sm:$0xff]  ;;  %v502_v24 = vld [vmem:[%s889_s6 + $0x10] sm:$0xff]  ;;  %vm544_vm5 = vcmask 523264  }
   0xd   : > { %s417_s16 = scalar_lea.vmem %s883_s0, %s796_s13  ;;  %v689_v5 = vld [vmem:[%s886_s3] ss:$0 sm:$0xff]  ;;  %s421_s22 = scalar_lea.vmem %s884_s1, %s796_s13  ;;  %523 = vmatpush.msra.mxu1 %v503_v23  ;;  %v501_v25 = vld [vmem:[%s889_s6 + $0x8] sm:$0xff]  ;;  %v539_v27 = vld [vmem:[%s891_s8 + $0x38] sm:$0xff] }
   0xe   : > { %452 = vmatpush.msra.mxu0 %v429_v1  ;;  %v426_v4 = vld [vmem:[%s417_s16] sm:$0xff]  ;;  %v538_v28 = vld [vmem:[%s891_s8 + $0x30] sm:$0xff]  ;;  %556 = vmatpush.msra.mxu2 %v539_v27  ;;  %v537_v29 = vld [vmem:[%s891_s8 + $0x28] sm:$0xff]  ;;  %s425_s29 = scalar_lea.vmem %s895_s12, %s796_s13 }
   0xf   : > { %v459_v7 = vld [vmem:[%s421_s22] sm:$0xff]  ;;  %524 = vmatpush.msra.mxu1 %v502_v24  ;;  %v535_v34 = vld [vmem:[%s891_s8 + $0x18] sm:$0xff]  ;;  %v534_v47 = vld [vmem:[%s891_s8 + $0x10] sm:$0xff] }
  0x10   : > { %453 = vmatpush.msra.mxu0 %v428_v2  ;;  %v500_v26 = vld [vmem:[%s889_s6] sm:$0xff]  ;;  %557 = vmatpush.msra.mxu2 %v538_v28  ;;  %v533_v48 = vld [vmem:[%s891_s8 + $0x8] sm:$0xff] }
  0x11   : > { %525 = vmatpush.msra.mxu1 %v501_v25  ;;  %v536_v32 = vld [vmem:[%s891_s8 + $0x20] sm:$0xff] }
  0x12   : > { %454 = vmatpush.msra.mxu0 %v427_v3  ;;  %v697_v12 = vpop.eup %696  ;;  %558 = vmatpush.msra.mxu2 %v537_v29  ;;  %v690_v41 = vld [vmem:[%s887_s4] ss:$0 sm:$0xff] }
  0x13   : > { %675 = vmatmul.msk.f32.vlgmr.msra.gmra.mxu0 %vm435_vm0, %v426_v4  ;;  %v465_v13 = vmul.f32 32.0, %v697_v12  ;;  %vm469_vm1 = vweird.f32 %v697_v12  ;;  %526 = vmatpush.msra.mxu1 %v500_v26  ;;  %v691_v44 = vld [vmem:[%s888_s5] ss:$0 sm:$0xff] }
  0x14   : > { %559 = vmatpush.msra.mxu2 %v536_v32  ;;  %v532_v49 = vld [vmem:[%s891_s8] sm:$0xff] }
  0x15   : > { %v466_v14 = vsub.f32 1.0, %v465_v13  ;;  %v692_v50 = vld [vmem:[%s890_s7] ss:$0 sm:$0xff] }
  0x16   : > { %560 = vmatpush.msra.mxu2 %v535_v34  ;;  %v693_v54 = vld [vmem:[%s892_s9] ss:$0 sm:$0xff] }
  0x17   : > { %v467_v15 = vmul.f32 %v697_v12, %v466_v14  ;;  %v695_v11 = vld [vmem:[%s894_s11] ss:$0 sm:$0xff] }
  0x18   : > { %561 = vmatpush.msra.mxu2 %v534_v47 }
  0x19   : > { %v468_v16 = vadd.f32 %v697_v12, %v467_v15 }
  0x1a   : > { %562 = vmatpush.msra.mxu2 %v533_v48 }
  0x1b   : > { %v811_v17 = vsel %vm469_vm1, %v697_v12, %v468_v16 }
  0x1c   : > { %563 = vmatpush.msra.mxu2 %v532_v49 }
  0x90   : > { %v456_v6 = vpop.f32.mrf.mxu0 }
  0x91   : > { %v457_v8 = vadd.f32 %v689_v5, %v456_v6 }
  0x93   : > { %v460_v9 = vadd.f32 %v459_v7, %v457_v8 }
  0x95   : > { %v461_v10 = vsel %vm435_vm0, %v460_v9, 0.0 }
  0x96   : > { %462 = vadd.xlane.f32.xlu0 %v461_v10 }
 0x109   : > { %v463_v18 = vpop.xlane.xlu0 %462 }
 0x10a   : > { %v471_v19 = vmul.f32 %v811_v17, %v463_v18 }
 0x10c   : > { %v472_v20 = vsub.f32 %v460_v9, %v471_v19  ;;  %v694_v9 = vld [vmem:[%s893_s10] ss:$0 sm:$0xff] }
 0x10e   : > { %v473_v21 = vmul.f32 %v472_v20, %v472_v20 }
 0x110   : > { %v474_v22 = vsel %vm435_vm0, %v473_v21, 0.0 }
 0x111   : > { %475 = vadd.xlane.f32.xlu0 %v474_v22 }
 0x184   : > { %v476_v30 = vpop.xlane.xlu0 %475 }
 0x185   : > { %v477_v31 = vmul.f32 %v476_v30, %v811_v17 }
 0x187   : > { %v478_v33 = vadd.f32 1e-05, %v477_v31 }
 0x189   : > { %698 = vrsqrt.f32 %v478_v33  ;;  %vm485_vm3 = vweird.f32 %v478_v33 }
 0x18f   : > { %v699_v35 = vpop.eup %698 }
 0x190   : > { %v480_v36 = vmul.f32 %v699_v35, %v478_v33  ;;  %vm486_vm2 = vweird.f32 %v699_v35 }
 0x191   : > { %vm487_vm4 = vmor %vm485_vm3, %vm486_vm2 }
 0x192   : > { %v481_v37 = vmul.f32 %v699_v35, %v480_v36 }
 0x194   : > { %v482_v38 = vmul.f32 0.5, %v481_v37 }
 0x196   : > { %v483_v39 = vsub.f32 1.5, %v482_v38 }
 0x198   : > { %v484_v40 = vmul.f32 %v699_v35, %v483_v39 }
 0x19a   : > { %v488_v42 = vsel %vm487_vm4, %v699_v35, %v484_v40 }
 0x19b   : > { %v489_v43 = vmul.f32 %v488_v42, %v472_v20 }
 0x19d   : > { %v494_v45 = vmul.f32 %v690_v41, %v489_v43 }
 0x19f   : > { %v499_v46 = vadd.f32 %v691_v44, %v494_v45 }
 0x1a1   : > { %676 = vmatmul.msk.f32.vlgmr.msra.gmra.mxu1 %vm435_vm0, %v499_v46 }
 0x21e   : > { %v528_v51 = vpop.f32.mrf.mxu1 }
 0x21f   : > { %v529_v52 = vadd.f32 %v692_v50, %v528_v51 }
 0x221   : > { %v531_v53 = vmax.f32 %v529_v52, 0.0 }
 0x223   : > { %677 = vmatmul.msk.f32.vlgmr.msra.gmra.mxu2 %vm544_vm5, %v531_v53 }
 0x2a6   : > { %v565_v55 = vpop.f32.mrf.mxu2 }
 0x2a7   : > { %v566_v56 = vadd.f32 %v693_v54, %v565_v55 }
 0x2a9   : > { %v568_v57 = vadd.f32 %v566_v56, %v499_v46 }
 0x2ab   : > { %v569_v58 = vsel %vm435_vm0, %v568_v57, 0.0 }
 0x2ac   : > { %570 = vadd.xlane.f32.xlu1 %v569_v58 }
 0x31f   : > { %v571_v59 = vpop.xlane.xlu1 %570 }
 0x320   : > { %v572_v60 = vmul.f32 %v571_v59, %v811_v17 }
 0x322   : > { %v573_v61 = vsub.f32 %v568_v57, %v572_v60 }
 0x324   : > { %v574_v62 = vmul.f32 %v573_v61, %v573_v61 }
 0x326   : > { %v575_v63 = vsel %vm435_vm0, %v574_v62, 0.0 }
 0x327   : > { %576 = vadd.xlane.f32.xlu1 %v575_v63 }
 0x39a   : > { %v577_v0 = vpop.xlane.xlu1 %576 }
 0x39b   : > { %v578_v1 = vmul.f32 %v577_v0, %v811_v17 }
 0x39d   : > { %v579_v2 = vadd.f32 1e-05, %v578_v1 }
 0x39f   : > { %700 = vrsqrt.f32 %v579_v2  ;;  %vm586_vm7 = vweird.f32 %v579_v2 }
 0x3a5   : > { %v701_v3 = vpop.eup %700 }
 0x3a6   : > { %v581_v4 = vmul.f32 %v701_v3, %v579_v2  ;;  %vm587_vm6 = vweird.f32 %v701_v3 }
 0x3a7   : > { %vm588_vm8 = vmor %vm586_vm7, %vm587_vm6 }
 0x3a8   : > { %v582_v5 = vmul.f32 %v701_v3, %v581_v4 }
 0x3aa   : > { %v583_v6 = vmul.f32 0.5, %v582_v5 }
 0x3ac   : > { %v584_v7 = vsub.f32 1.5, %v583_v6 }
 0x3ae   : > { %v585_v8 = vmul.f32 %v701_v3, %v584_v7 }
 0x3b0   : > { %v589_v10 = vsel %vm588_vm8, %v701_v3, %v585_v8 }
 0x3b1   : > { %v590_v12 = vmul.f32 %v589_v10, %v573_v61 }
 0x3b3   : > { %v595_v13 = vmul.f32 %v694_v9, %v590_v12 }
 0x3b5   : > { %v600_v14 = vadd.f32 %v695_v11, %v595_v13 }
 0x3b7   : > { %601 = vst.msk [vmem:[%s425_s29] sm:$0xff] %vm435_vm0, %v600_v14 }
 0x3b8 PF: > { %s22_s21 = sadd.s32 1, %s708_s21  }
 0x3b9   : > { %p19_p4 = scmp.ge.s32.totalorder %s22_s21, 4  }
 0x3bb   :  { %21 = sbr.rel (!%p19_p4) target bundleno = 1 (0x1), region = 101 }

</bundles_post_ra>
